<compile_context>
chip_gen: v7x
topology: tpu7x:2x2x1
jax: 0.10.0
libtpu: 0.0.40
codegen_flags: <defaults>
</compile_context>

<pallas_src>
import functools

import jax
import jax.numpy as jnp
from jax import lax
from jax.experimental import pallas as pl
from jax.experimental.pallas import tpu as pltpu

_HIGHEST = jax.lax.Precision.HIGHEST


def _round_up(x, m):
    return (x + m - 1) // m * m


def _choose_time_block(T, step_bytes, target_bytes=2 * 1024 * 1024, min_blocks=4):
    """Largest divisor of T whose block stays under ~target_bytes while leaving at least
    min_blocks grid steps (so the gx/out streams are actually software-pipelined)."""
    best = 1
    want_blocks = min(min_blocks, T)
    for d in range(1, T + 1):
        if T % d:
            continue
        if d * step_bytes <= target_bytes and (T // d) >= want_blocks:
            best = d
    return best


# ----------------------------------------------------------------------------
# In-kernel GRU time loop (both directions fused along lanes).
#   gx_ref : (tb, B, 6*Hp) bf16, hoisted input projection (+ b_ih, + b_hh for r/z).
#            Lane layout: [r_f r_b | z_f z_b | n_f n_b]; direction 1 is already
#            time-reversed so both directions share the step index t.
#   whh    : (2*Hp, 6*Hp)  bf16 block-diagonal recurrent weights (rows: [h_f | h_b]).
#   bhn    : (1, 2*Hp)     f32 n-gate recurrent bias [b_hn_f | b_hn_b].
#   h0     : (B, 2*Hp)     f32 hidden-state carry [h_f | h_b].
# ----------------------------------------------------------------------------
def _gru_time_loop(gx_ref, whh, bhn, h0, *, tb, hp, unroll, out_ref=None):
    b = h0.shape[0]
    # Hoisted once per grid step (broadcast_in_dim is not CSE'd inside the unrolled loop).
    bhn_b = jnp.broadcast_to(bhn, (b, 2 * hp))

    def step(t, h):
        gx = gx_ref[t].astype(jnp.float32)                       # (B, 6Hp)
        # ONE block-diagonal MXU push for both directions: (B,2Hp)@(2Hp,6Hp), f32 acc.
        gh = jnp.dot(h.astype(jnp.bfloat16), whh,
                     preferred_element_type=jnp.float32)         # (B, 6Hp)
        r = jax.nn.sigmoid(gx[:, 0 * hp:2 * hp] + gh[:, 0 * hp:2 * hp])
        z = jax.nn.sigmoid(gx[:, 2 * hp:4 * hp] + gh[:, 2 * hp:4 * hp])
        n = jnp.tanh(gx[:, 4 * hp:6 * hp] + r * (gh[:, 4 * hp:6 * hp] + bhn_b))
        h_new = (1.0 - z) * n + z * h                            # (B, 2Hp) f32
        if out_ref is not None:
            out_ref[t] = h_new.astype(out_ref.dtype)             # lane-dense bf16 store
        return h_new

    return lax.fori_loop(0, tb, step, h0, unroll=unroll)


# ----------------------------------------------------------------------------
# Kernel for a non-final layer: emits per-step outputs [h_f | h_b] for the next layer.
# ----------------------------------------------------------------------------
def _bigru_layer_kernel(gx_ref, whh_ref, bhn_ref, out_ref, h_scr, *, tb, hp, unroll):
    @pl.when(pl.program_id(0) == 0)
    def _():
        h_scr[...] = jnp.zeros_like(h_scr)

    h = _gru_time_loop(gx_ref, whh_ref[...], bhn_ref[...], h_scr[...],
                       tb=tb, hp=hp, unroll=unroll, out_ref=out_ref)
    h_scr[...] = h


# ----------------------------------------------------------------------------
# Kernel for the final layer: hidden state lives in scratch only; the classification
# head (mean over directions + linear) is fused into the last grid step.
# ----------------------------------------------------------------------------
def _bigru_last_kernel(gx_ref, whh_ref, bhn_ref, fcw_ref, fcb_ref,
                       enc_ref, logits_ref, h_scr, *, tb, hp, unroll):
    @pl.when(pl.program_id(0) == 0)
    def _():
        h_scr[...] = jnp.zeros_like(h_scr)

    h = _gru_time_loop(gx_ref, whh_ref[...], bhn_ref[...], h_scr[...],
                       tb=tb, hp=hp, unroll=unroll, out_ref=None)
    h_scr[...] = h

    @pl.when(pl.program_id(0) == pl.num_programs(0) - 1)
    def _():
        enc = 0.5 * (h[:, :hp] + h[:, hp:])                      # mean over 2 directions
        enc_ref[...] = enc
        logits_ref[...] = (
            jnp.dot(enc, fcw_ref[...], preferred_element_type=jnp.float32)
            + fcb_ref[...])


# ----------------------------------------------------------------------------
# pallas_call wrappers
# ----------------------------------------------------------------------------
def _vmem_limit(*byte_counts):
    need = 2 * sum(byte_counts) + (4 << 20)                      # double-buffer + slack
    return int(min(max(need, 32 << 20), 64 << 20))               # v7x physical = 64 MiB


def bigru_layer(gx, whh, bhn, *, time_block=None):
    """gx: (T, B, 6Hp) bf16. Returns per-step outputs (T, B, 2Hp) bf16 in processing order."""
    T, B, sixHp = gx.shape
    Hp = sixHp // 6
    step_bytes = B * sixHp * gx.dtype.itemsize + B * 2 * Hp * 2  # gx + out per time step
    tb = time_block if time_block is not None else _choose_time_block(T, step_bytes)
    assert T % tb == 0, "time_block must divide T"
    nblk = T // tb
    unroll = max(1, min(tb, 8))
    fixed = whh.size * whh.dtype.itemsize + bhn.size * 4 + B * 2 * Hp * 4
    return pl.pallas_call(
        functools.partial(_bigru_layer_kernel, tb=tb, hp=Hp, unroll=unroll),
        out_shape=jax.ShapeDtypeStruct((T, B, 2 * Hp), jnp.bfloat16),
        grid_spec=pltpu.PrefetchScalarGridSpec(
            num_scalar_prefetch=0,
            grid=(nblk,),
            in_specs=[
                pl.BlockSpec((tb, B, sixHp), lambda i: (i, 0, 0)),
                pl.BlockSpec((2 * Hp, sixHp), lambda i: (0, 0)),
                pl.BlockSpec((1, 2 * Hp), lambda i: (0, 0)),
            ],
            out_specs=pl.BlockSpec((tb, B, 2 * Hp), lambda i: (i, 0, 0)),
            scratch_shapes=[pltpu.VMEM((B, 2 * Hp), jnp.float32)],
        ),
        compiler_params=pltpu.CompilerParams(
            dimension_semantics=("arbitrary",),                  # serial recurrence
            vmem_limit_bytes=_vmem_limit(tb * step_bytes, fixed)),
    )(gx, whh, bhn)


def bigru_last_layer(gx, whh, bhn, fcw, fcb, *, time_block=None):
    """Last layer with the classification head fused. Returns (enc_p, logits_p), f32."""
    T, B, sixHp = gx.shape
    Hp = sixHp // 6
    Lp = fcw.shape[-1]
    step_bytes = B * sixHp * gx.dtype.itemsize
    tb = time_block if time_block is not None else _choose_time_block(T, step_bytes)
    assert T % tb == 0, "time_block must divide T"
    nblk = T // tb
    unroll = max(1, min(tb, 8))
    fixed = (whh.size * whh.dtype.itemsize + bhn.size * 4
             + fcw.size * 4 + fcb.size * 4 + B * (2 * Hp + Hp + Lp) * 4)
    return pl.pallas_call(
        functools.partial(_bigru_last_kernel, tb=tb, hp=Hp, unroll=unroll),
        out_shape=(jax.ShapeDtypeStruct((B, Hp), jnp.float32),
                   jax.ShapeDtypeStruct((B, Lp), jnp.float32)),
        grid_spec=pltpu.PrefetchScalarGridSpec(
            num_scalar_prefetch=0,
            grid=(nblk,),
            in_specs=[
                pl.BlockSpec((tb, B, sixHp), lambda i: (i, 0, 0)),
                pl.BlockSpec((2 * Hp, sixHp), lambda i: (0, 0)),
                pl.BlockSpec((1, 2 * Hp), lambda i: (0, 0)),
                pl.BlockSpec((Hp, Lp), lambda i: (0, 0)),
                pl.BlockSpec((1, Lp), lambda i: (0, 0)),
            ],
            out_specs=[pl.BlockSpec((B, Hp), lambda i: (0, 0)),
                       pl.BlockSpec((B, Lp), lambda i: (0, 0))],
            scratch_shapes=[pltpu.VMEM((B, 2 * Hp), jnp.float32)],
        ),
        compiler_params=pltpu.CompilerParams(
            dimension_semantics=("arbitrary",),
            vmem_limit_bytes=_vmem_limit(tb * step_bytes, fixed)),
    )(gx, whh, bhn, fcw, fcb)


# ----------------------------------------------------------------------------
# Weight packing helpers (all padding is zero, so padded hidden lanes stay 0).
# ----------------------------------------------------------------------------
def _pack_gate_cols(w, H, Hp):
    """(..., 3H) torch gate order [r|z|n] -> (..., 3Hp), gate g at lanes [g*Hp, g*Hp+H)."""
    out = jnp.zeros(w.shape[:-1] + (3 * Hp,), jnp.float32)
    for g in range(3):
        out = out.at[..., g * Hp:g * Hp + H].set(w[..., g * H:(g + 1) * H])
    return out


def _pack_whh_blockdiag(layer, H, Hp):
    """Block-diagonal, gate-interleaved recurrent weights (2Hp, 6Hp), bf16.
    Row layout [h_f | h_b]; column layout [r_f r_b | z_f z_b | n_f n_b]."""
    out = jnp.zeros((2 * Hp, 6 * Hp), jnp.float32)
    for d in range(2):
        w = _pack_gate_cols(layer[d]["whh"], H, Hp)              # (H, 3Hp)
        for g in range(3):
            out = out.at[d * Hp:d * Hp + H,
                         (2 * g + d) * Hp:(2 * g + d + 1) * Hp].set(w[:, g * Hp:(g + 1) * Hp])
    return out.astype(jnp.bfloat16)


def _gate_bias(bih, bhh, H, Hp):
    """b_ih (all gates) + b_hh (r and z only) packed to (3Hp,) f32; the n-gate
    recurrent bias stays inside the kernel (it is multiplied by r)."""
    b = jnp.zeros((3 * Hp,), jnp.float32)
    for g in range(3):
        v = bih[g * H:(g + 1) * H]
        if g < 2:
            v = v + bhh[g * H:(g + 1) * H]
        b = b.at[g * Hp:g * Hp + H].set(v)
    return b


def _pad_rows(w, Hp):
    out = jnp.zeros((Hp,) + w.shape[1:], jnp.float32)
    return out.at[:w.shape[0]].set(w)


# ----------------------------------------------------------------------------
# Full forward pass. Glue (embedding gather, hoisted input projection, packing)
# is plain XLA; the serial recurrence + fused head are Pallas kernels.
# ----------------------------------------------------------------------------
def bigru_forward(params, input_ids, *, time_block=None):
    H = params["gru"][0][0]["whh"].shape[0]
    L = params["fc_w"].shape[1]
    Hp = _round_up(H, 128)
    Lp = _round_up(L, 128)

    x = jnp.take(params["emb"], input_ids, axis=0)               # (B, T, E)
    x = jnp.transpose(x, (1, 0, 2)).astype(jnp.bfloat16)         # time-major, bf16 storage
    T, B, _ = x.shape
    num_layers = len(params["gru"])

    prev = None            # (T, B, 2Hp) bf16: [h_f | h_b] per processing step
    enc_p = logits_p = None
    for l, layer in enumerate(params["gru"]):
        whh_bd = _pack_whh_blockdiag(layer, H, Hp)               # (2Hp, 6Hp) bf16
        bhn = (jnp.zeros((1, 2 * Hp), jnp.float32)
               .at[0, :H].set(layer[0]["bhh"][2 * H:])
               .at[0, Hp:Hp + H].set(layer[1]["bhh"][2 * H:]))
        b0 = _gate_bias(layer[0]["bih"], layer[0]["bhh"], H, Hp)
        b1 = _gate_bias(layer[1]["bih"], layer[1]["bhh"], H, Hp)

        # ---- hoisted input projection (time-independent, lane-dense, bf16 MXU) ------
        # gx0[t] uses input position t (fwd); gx1[t] uses position T-1-t (bwd).
        if l == 0:
            w0 = _pack_gate_cols(layer[0]["wih"], H, Hp).astype(jnp.bfloat16)  # (E, 3Hp)
            w1 = _pack_gate_cols(layer[1]["wih"], H, Hp).astype(jnp.bfloat16)
            gx0 = jnp.einsum("tbe,ek->tbk", x, w0,
                             preferred_element_type=jnp.float32) + b0
            gx1 = jnp.einsum("tbe,ek->tbk", x[::-1], w1,
                             preferred_element_type=jnp.float32) + b1
        else:
            of, ob = prev[..., :Hp], prev[..., Hp:]              # fwd / bwd slabs (no concat)
            wp0 = _pack_gate_cols(layer[0]["wih"], H, Hp)        # (2H, 3Hp)
            wp1 = _pack_gate_cols(layer[1]["wih"], H, Hp)
            w0f = _pad_rows(wp0[:H], Hp).astype(jnp.bfloat16)
            w0b = _pad_rows(wp0[H:], Hp).astype(jnp.bfloat16)
            w1f = _pad_rows(wp1[:H], Hp).astype(jnp.bfloat16)
            w1b = _pad_rows(wp1[H:], Hp).astype(jnp.bfloat16)
            gx0 = (jnp.einsum("tbh,hk->tbk", of, w0f, preferred_element_type=jnp.float32)
                   + jnp.einsum("tbh,hk->tbk", ob[::-1], w0b, preferred_element_type=jnp.float32)
                   + b0)
            gx1 = (jnp.einsum("tbh,hk->tbk", of[::-1], w1f, preferred_element_type=jnp.float32)
                   + jnp.einsum("tbh,hk->tbk", ob, w1b, preferred_element_type=jnp.float32)
                   + b1)

        # Interleave directions per gate: lanes become [r_f r_b | z_f z_b | n_f n_b].
        gx = jnp.stack([gx0.reshape(T, B, 3, Hp).astype(jnp.bfloat16),
                        gx1.reshape(T, B, 3, Hp).astype(jnp.bfloat16)], axis=3)
        gx = gx.reshape(T, B, 6 * Hp)                            # (T, B, 6Hp) bf16

        if l == num_layers - 1:
            fcw_p = jnp.zeros((Hp, Lp), jnp.float32).at[:H, :L].set(params["fc_w"])
            fcb_p = jnp.zeros((1, Lp), jnp.float32).at[0, :L].set(params["fc_b"])
            enc_p, logits_p = bigru_last_layer(gx, whh_bd, bhn, fcw_p, fcb_p,
                                               time_block=time_block)
        else:
            prev = bigru_layer(gx, whh_bd, bhn, time_block=time_block)

    # dropout: eval-mode identity
    return enc_p[:, :H], logits_p[:, :L]


# ----------------------------------------------------------------------------
# Deterministic parameter init (natural / unpadded layout, gate order r,z,n).
# ----------------------------------------------------------------------------
def init_params(key, vocab, emb_dim, hidden, num_layers, num_labels):
    keys = iter(jax.random.split(key, 1 + 8 * num_layers + 2))
    scale = 1.0 / float(hidden) ** 0.5

    def u(shape):
        return jax.random.uniform(next(keys), shape, jnp.float32, -scale, scale)

    params = {"emb": jax.random.normal(next(keys), (vocab, emb_dim), jnp.float32) * 0.1}
    layers = []
    for l in range(num_layers):
        d_in = emb_dim if l == 0 else 2 * hidden
        dirs = []
        for _ in range(2):                                        # forward, backward
            dirs.append(dict(wih=u((d_in, 3 * hidden)), whh=u((hidden, 3 * hidden)),
                             bih=u((3 * hidden,)), bhh=u((3 * hidden,))))
        layers.append(dirs)
    params["gru"] = layers
    params["fc_w"] = u((hidden, num_labels))
    params["fc_b"] = u((num_labels,))
    return params


# ----------------------------------------------------------------------------
# Pure-JAX f32 reference (same math as torch.nn.GRU) for correctness checking.
# ----------------------------------------------------------------------------
def _gru_dir_ref(x_seq, p, reverse, H):
    T, B, _ = x_seq.shape
    h = jnp.zeros((B, H), jnp.float32)
    outs = [None] * T
    order = range(T - 1, -1, -1) if reverse else range(T)
    for t in order:
        gx = jnp.dot(x_seq[t], p["wih"], precision=_HIGHEST) + p["bih"]
        gh = jnp.dot(h, p["whh"], precision=_HIGHEST) + p["bhh"]
        r = jax.nn.sigmoid(gx[:, :H] + gh[:, :H])
        z = jax.nn.sigmoid(gx[:, H:2 * H] + gh[:, H:2 * H])
        n = jnp.tanh(gx[:, 2 * H:] + r * gh[:, 2 * H:])
        h = (1.0 - z) * n + z * h
        outs[t] = h
    return jnp.stack(outs, 0), h


def forward_ref(params, input_ids):
    H = params["gru"][0][0]["whh"].shape[0]
    x = jnp.take(params["emb"], input_ids, axis=0).transpose(1, 0, 2)
    h_last = None
    for layer in params["gru"]:
        of, hf = _gru_dir_ref(x, layer[0], False, H)
        ob, hb = _gru_dir_ref(x, layer[1], True, H)
        x = jnp.concatenate([of, ob], axis=-1)
        h_last = jnp.stack([hf, hb], axis=0)
    enc = h_last.mean(axis=0)
    logits = jnp.dot(enc, params["fc_w"], precision=_HIGHEST) + params["fc_b"]
    return enc, logits


if __name__ == "__main__":
    VOCAB, EMB, HIDDEN, NUM_LAYERS, NUM_LABELS = 32, 64, 32, 2, 4
    B, T = 2, 8

    key = jax.random.PRNGKey(0)
    k_params, k_ids = jax.random.split(key)
    params = init_params(k_params, VOCAB, EMB, HIDDEN, NUM_LAYERS, NUM_LABELS)
    input_ids = jax.random.randint(k_ids, (B, T), 0, VOCAB, dtype=jnp.int32)

    enc, logits = jax.jit(bigru_forward)(params, input_ids)
    jax.block_until_ready((enc, logits))

    enc_ref, logits_ref = forward_ref(params, input_ids)
    assert enc.shape == (B, HIDDEN) and logits.shape == (B, NUM_LABELS)
    # bf16 storage / bf16 MXU path vs f32 reference: tolerance loosened per the review.
    assert jnp.allclose(enc, enc_ref, atol=3e-2, rtol=3e-2), \
        float(jnp.abs(enc - enc_ref).max())
    assert jnp.allclose(logits, logits_ref, atol=3e-2, rtol=3e-2), \
        float(jnp.abs(logits - logits_ref).max())

    print("KERNEL_OK")
</pallas_src>

<mosaic_0001>
module attributes {stable_mosaic.version = 11 : i64} {
  func.func @_bigru_layer_kernel(%arg0: i32, %arg1: memref<2x2x768xbf16, #tpu.memory_space<vmem>>, %arg2: memref<256x768xbf16, #tpu.memory_space<vmem>>, %arg3: memref<1x256xf32, #tpu.memory_space<vmem>>, %arg4: memref<2x2x256xbf16, #tpu.memory_space<vmem>>, %arg5: memref<2x256xf32, #tpu.memory_space<vmem>>) attributes {dimension_semantics = [#tpu.dimension_semantics<arbitrary>], iteration_bounds = array<i64: 4>, scalar_prefetch = 0 : i64, scratch_operands = 1 : i64, tpu.core_type = #tpu.core_type<tc>, window_params = [{transform_indices = @transform_0, window_bounds = array<i64: 2, 2, 768>}, {pipeline_mode = #tpu.pipeline_mode<synchronous>, transform_indices = @transform_1, window_bounds = array<i64: 256, 768>}, {pipeline_mode = #tpu.pipeline_mode<synchronous>, transform_indices = @transform_2, window_bounds = array<i64: 1, 256>}, {transform_indices = @transform_3, window_bounds = array<i64: 2, 2, 256>}]} {
    %c0_i32 = arith.constant 0 : i32
    %0 = arith.cmpi eq, %arg0, %c0_i32 : i32
    %1 = arith.extui %0 : i1 to i32
    %c0_i32_0 = arith.constant 0 : i32
    %2 = arith.cmpi ne, %1, %c0_i32_0 : i32
    scf.if %2 {
      %cst_24 = arith.constant 0.000000e+00 : f32
      %85 = vector.broadcast %cst_24 : f32 to vector<2x256xf32>
      %c0_25 = arith.constant 0 : index
      %c0_26 = arith.constant 0 : index
      %86 = vector.load %arg5[%c0_25, %c0_26] : memref<2x256xf32, #tpu.memory_space<vmem>>, vector<2x256xf32>
      tpu.vector_store %arg5[%c0_25, %c0_26], %85 {strides = array<i32>} : memref<2x256xf32, #tpu.memory_space<vmem>>, vector<2x256xf32>,
    } else {
    }
    %c0 = arith.constant 0 : index
    %c0_1 = arith.constant 0 : index
    %3 = vector.load %arg2[%c0, %c0_1] : memref<256x768xbf16, #tpu.memory_space<vmem>>, vector<256x768xbf16>
    %c0_2 = arith.constant 0 : index
    %c0_3 = arith.constant 0 : index
    %4 = vector.load %arg3[%c0_2, %c0_3] : memref<1x256xf32, #tpu.memory_space<vmem>>, vector<1x256xf32>
    %c0_4 = arith.constant 0 : index
    %c0_5 = arith.constant 0 : index
    %5 = vector.load %arg5[%c0_4, %c0_5] : memref<2x256xf32, #tpu.memory_space<vmem>>, vector<2x256xf32>
    %6 = vector.shape_cast %4 : vector<1x256xf32> to vector<1x256xf32>
    %7 = vector.broadcast %6 : vector<1x256xf32> to vector<2x256xf32>
    %c0_i32_6 = arith.constant 0 : i32
    %8 = arith.index_cast %c0_i32_6 : i32 to index
    %c0_7 = arith.constant 0 : index
    %c0_8 = arith.constant 0 : index
    %9 = vector.load %arg1[%8, %c0_7, %c0_8] : memref<2x2x768xbf16, #tpu.memory_space<vmem>>, vector<1x2x768xbf16>
    %10 = vector.shape_cast %9 : vector<1x2x768xbf16> to vector<2x768xbf16>
    %11 = arith.extf %10 : vector<2x768xbf16> to vector<2x768xf32>
    %12 = arith.truncf %5 : vector<2x256xf32> to vector<2x256xbf16>
    %cst = arith.constant dense<0.000000e+00> : vector<2x768xf32>
    %13 = tpu.matmul %12, %3, %cst {dimension_numbers = #tpu.dot_dimension_numbers<[1], [0], [0], [1], [0, 0, 1, 1], [], []>} : vector<2x256xbf16>, vector<256x768xbf16>, vector<2x768xf32> -> vector<2x768xf32>
    %14 = vector.extract_strided_slice %11 {offsets = [0, 0], sizes = [2, 256], strides = [1, 1]} : vector<2x768xf32> to vector<2x256xf32>
    %15 = vector.extract_strided_slice %13 {offsets = [0, 0], sizes = [2, 256], strides = [1, 1]} : vector<2x768xf32> to vector<2x256xf32>
    %16 = arith.addf %14, %15 : vector<2x256xf32>
    %17 = arith.negf %16 : vector<2x256xf32>
    %18 = math.exp %17 : vector<2x256xf32>
    %cst_9 = arith.constant 1.000000e+00 : f32
    %19 = vector.broadcast %cst_9 : f32 to vector<2x256xf32>
    %20 = arith.addf %19, %18 : vector<2x256xf32>
    %21 = arith.divf %19, %20 : vector<2x256xf32>
    %22 = vector.extract_strided_slice %11 {offsets = [0, 256], sizes = [2, 256], strides = [1, 1]} : vector<2x768xf32> to vector<2x256xf32>
    %23 = vector.extract_strided_slice %13 {offsets = [0, 256], sizes = [2, 256], strides = [1, 1]} : vector<2x768xf32> to vector<2x256xf32>
    %24 = arith.addf %22, %23 : vector<2x256xf32>
    %25 = arith.negf %24 : vector<2x256xf32>
    %26 = math.exp %25 : vector<2x256xf32>
    %cst_10 = arith.constant 1.000000e+00 : f32
    %27 = vector.broadcast %cst_10 : f32 to vector<2x256xf32>
    %28 = arith.addf %27, %26 : vector<2x256xf32>
    %29 = arith.divf %27, %28 : vector<2x256xf32>
    %30 = vector.extract_strided_slice %11 {offsets = [0, 512], sizes = [2, 256], strides = [1, 1]} : vector<2x768xf32> to vector<2x256xf32>
    %31 = vector.extract_strided_slice %13 {offsets = [0, 512], sizes = [2, 256], strides = [1, 1]} : vector<2x768xf32> to vector<2x256xf32>
    %32 = arith.addf %31, %7 : vector<2x256xf32>
    %33 = arith.mulf %21, %32 : vector<2x256xf32>
    %34 = arith.addf %30, %33 : vector<2x256xf32>
    %35 = math.tanh %34 : vector<2x256xf32>
    %cst_11 = arith.constant 1.000000e+00 : f32
    %36 = vector.broadcast %cst_11 : f32 to vector<2x256xf32>
    %37 = arith.subf %36, %29 : vector<2x256xf32>
    %38 = arith.mulf %37, %35 : vector<2x256xf32>
    %39 = arith.mulf %29, %5 : vector<2x256xf32>
    %40 = arith.addf %38, %39 : vector<2x256xf32>
    %41 = arith.truncf %40 : vector<2x256xf32> to vector<2x256xbf16>
    %42 = arith.index_cast %c0_i32_6 : i32 to index
    %c0_12 = arith.constant 0 : index
    %c0_13 = arith.constant 0 : index
    %43 = vector.load %arg4[%42, %c0_12, %c0_13] : memref<2x2x256xbf16, #tpu.memory_space<vmem>>, vector<1x2x256xbf16>
    %44 = vector.shape_cast %43 : vector<1x2x256xbf16> to vector<2x256xbf16>
    %45 = vector.shape_cast %41 : vector<2x256xbf16> to vector<1x2x256xbf16>
    tpu.vector_store %arg4[%42, %c0_12, %c0_13], %45 {strides = array<i32>} : memref<2x2x256xbf16, #tpu.memory_space<vmem>>, vector<1x2x256xbf16>,
    %c1_i32 = arith.constant 1 : i32
    %46 = arith.index_cast %c1_i32 : i32 to index
    %c0_14 = arith.constant 0 : index
    %c0_15 = arith.constant 0 : index
    %47 = vector.load %arg1[%46, %c0_14, %c0_15] : memref<2x2x768xbf16, #tpu.memory_space<vmem>>, vector<1x2x768xbf16>
    %48 = vector.shape_cast %47 : vector<1x2x768xbf16> to vector<2x768xbf16>
    %49 = arith.extf %48 : vector<2x768xbf16> to vector<2x768xf32>
    %50 = arith.truncf %40 : vector<2x256xf32> to vector<2x256xbf16>
    %cst_16 = arith.constant dense<0.000000e+00> : vector<2x768xf32>
    %51 = tpu.matmul %50, %3, %cst_16 {dimension_numbers = #tpu.dot_dimension_numbers<[1], [0], [0], [1], [0, 0, 1, 1], [], []>} : vector<2x256xbf16>, vector<256x768xbf16>, vector<2x768xf32> -> vector<2x768xf32>
    %52 = vector.extract_strided_slice %49 {offsets = [0, 0], sizes = [2, 256], strides = [1, 1]} : vector<2x768xf32> to vector<2x256xf32>
    %53 = vector.extract_strided_slice %51 {offsets = [0, 0], sizes = [2, 256], strides = [1, 1]} : vector<2x768xf32> to vector<2x256xf32>
    %54 = arith.addf %52, %53 : vector<2x256xf32>
    %55 = arith.negf %54 : vector<2x256xf32>
    %56 = math.exp %55 : vector<2x256xf32>
    %cst_17 = arith.constant 1.000000e+00 : f32
    %57 = vector.broadcast %cst_17 : f32 to vector<2x256xf32>
    %58 = arith.addf %57, %56 : vector<2x256xf32>
    %59 = arith.divf %57, %58 : vector<2x256xf32>
    %60 = vector.extract_strided_slice %49 {offsets = [0, 256], sizes = [2, 256], strides = [1, 1]} : vector<2x768xf32> to vector<2x256xf32>
    %61 = vector.extract_strided_slice %51 {offsets = [0, 256], sizes = [2, 256], strides = [1, 1]} : vector<2x768xf32> to vector<2x256xf32>
    %62 = arith.addf %60, %61 : vector<2x256xf32>
    %63 = arith.negf %62 : vector<2x256xf32>
    %64 = math.exp %63 : vector<2x256xf32>
    %cst_18 = arith.constant 1.000000e+00 : f32
    %65 = vector.broadcast %cst_18 : f32 to vector<2x256xf32>
    %66 = arith.addf %65, %64 : vector<2x256xf32>
    %67 = arith.divf %65, %66 : vector<2x256xf32>
    %68 = vector.extract_strided_slice %49 {offsets = [0, 512], sizes = [2, 256], strides = [1, 1]} : vector<2x768xf32> to vector<2x256xf32>
    %69 = vector.extract_strided_slice %51 {offsets = [0, 512], sizes = [2, 256], strides = [1, 1]} : vector<2x768xf32> to vector<2x256xf32>
    %70 = arith.addf %69, %7 : vector<2x256xf32>
    %71 = arith.mulf %59, %70 : vector<2x256xf32>
    %72 = arith.addf %68, %71 : vector<2x256xf32>
    %73 = math.tanh %72 : vector<2x256xf32>
    %cst_19 = arith.constant 1.000000e+00 : f32
    %74 = vector.broadcast %cst_19 : f32 to vector<2x256xf32>
    %75 = arith.subf %74, %67 : vector<2x256xf32>
    %76 = arith.mulf %75, %73 : vector<2x256xf32>
    %77 = arith.mulf %67, %40 : vector<2x256xf32>
    %78 = arith.addf %76, %77 : vector<2x256xf32>
    %79 = arith.truncf %78 : vector<2x256xf32> to vector<2x256xbf16>
    %80 = arith.index_cast %c1_i32 : i32 to index
    %c0_20 = arith.constant 0 : index
    %c0_21 = arith.constant 0 : index
    %81 = vector.load %arg4[%80, %c0_20, %c0_21] : memref<2x2x256xbf16, #tpu.memory_space<vmem>>, vector<1x2x256xbf16>
    %82 = vector.shape_cast %81 : vector<1x2x256xbf16> to vector<2x256xbf16>
    %83 = vector.shape_cast %79 : vector<2x256xbf16> to vector<1x2x256xbf16>
    tpu.vector_store %arg4[%80, %c0_20, %c0_21], %83 {strides = array<i32>} : memref<2x2x256xbf16, #tpu.memory_space<vmem>>, vector<1x2x256xbf16>,
    %c2_i32 = arith.constant 2 : i32
    %c0_22 = arith.constant 0 : index
    %c0_23 = arith.constant 0 : index
    %84 = vector.load %arg5[%c0_22, %c0_23] : memref<2x256xf32, #tpu.memory_space<vmem>>, vector<2x256xf32>
    tpu.vector_store %arg5[%c0_22, %c0_23], %78 {strides = array<i32>} : memref<2x256xf32, #tpu.memory_space<vmem>>, vector<2x256xf32>,
    return
  }
  func.func @transform_0(%arg0: i32) -> (i32, i32, i32) {
    %c0_i32 = arith.constant 0 : i32
    %c0_i32_0 = arith.constant 0 : i32
    %c0_i32_1 = arith.constant 0 : i32
    return %arg0, %c0_i32, %c0_i32_0 : i32, i32, i32
  }
  func.func @transform_1(%arg0: i32) -> (i32, i32) {
    %c0_i32 = arith.constant 0 : i32
    %c0_i32_0 = arith.constant 0 : i32
    %c0_i32_1 = arith.constant 0 : i32
    return %c0_i32, %c0_i32_0 : i32, i32
  }
  func.func @transform_2(%arg0: i32) -> (i32, i32) {
    %c0_i32 = arith.constant 0 : i32
    %c0_i32_0 = arith.constant 0 : i32
    %c0_i32_1 = arith.constant 0 : i32
    return %c0_i32, %c0_i32_0 : i32, i32
  }
  func.func @transform_3(%arg0: i32) -> (i32, i32, i32) {
    %c0_i32 = arith.constant 0 : i32
    %c0_i32_0 = arith.constant 0 : i32
    %c0_i32_1 = arith.constant 0 : i32
    return %arg0, %c0_i32, %c0_i32_0 : i32, i32, i32
  }
}

module attributes {stable_mosaic.version = 11 : i64} {
  func.func @_bigru_last_kernel(%arg0: i32, %arg1: memref<2x2x768xbf16, #tpu.memory_space<vmem>>, %arg2: memref<256x768xbf16, #tpu.memory_space<vmem>>, %arg3: memref<1x256xf32, #tpu.memory_space<vmem>>, %arg4: memref<128x128xf32, #tpu.memory_space<vmem>>, %arg5: memref<1x128xf32, #tpu.memory_space<vmem>>, %arg6: memref<2x128xf32, #tpu.memory_space<vmem>>, %arg7: memref<2x128xf32, #tpu.memory_space<vmem>>, %arg8: memref<2x256xf32, #tpu.memory_space<vmem>>) attributes {dimension_semantics = [#tpu.dimension_semantics<arbitrary>], iteration_bounds = array<i64: 4>, scalar_prefetch = 0 : i64, scratch_operands = 1 : i64, tpu.core_type = #tpu.core_type<tc>, window_params = [{transform_indices = @transform_0, window_bounds = array<i64: 2, 2, 768>}, {pipeline_mode = #tpu.pipeline_mode<synchronous>, transform_indices = @transform_1, window_bounds = array<i64: 256, 768>}, {pipeline_mode = #tpu.pipeline_mode<synchronous>, transform_indices = @transform_2, window_bounds = array<i64: 1, 256>}, {pipeline_mode = #tpu.pipeline_mode<synchronous>, transform_indices = @transform_3, window_bounds = array<i64: 128, 128>}, {pipeline_mode = #tpu.pipeline_mode<synchronous>, transform_indices = @transform_4, window_bounds = array<i64: 1, 128>}, {pipeline_mode = #tpu.pipeline_mode<synchronous>, transform_indices = @transform_5, window_bounds = array<i64: 2, 128>}, {pipeline_mode = #tpu.pipeline_mode<synchronous>, transform_indices = @transform_6, window_bounds = array<i64: 2, 128>}]} {
    %c0_i32 = arith.constant 0 : i32
    %0 = arith.cmpi eq, %arg0, %c0_i32 : i32
    %1 = arith.extui %0 : i1 to i32
    %c0_i32_0 = arith.constant 0 : i32
    %2 = arith.cmpi ne, %1, %c0_i32_0 : i32
    scf.if %2 {
      %cst_21 = arith.constant 0.000000e+00 : f32
      %78 = vector.broadcast %cst_21 : f32 to vector<2x256xf32>
      %c0_22 = arith.constant 0 : index
      %c0_23 = arith.constant 0 : index
      %79 = vector.load %arg8[%c0_22, %c0_23] : memref<2x256xf32, #tpu.memory_space<vmem>>, vector<2x256xf32>
      tpu.vector_store %arg8[%c0_22, %c0_23], %78 {strides = array<i32>} : memref<2x256xf32, #tpu.memory_space<vmem>>, vector<2x256xf32>,
    } else {
    }
    %c0 = arith.constant 0 : index
    %c0_1 = arith.constant 0 : index
    %3 = vector.load %arg2[%c0, %c0_1] : memref<256x768xbf16, #tpu.memory_space<vmem>>, vector<256x768xbf16>
    %c0_2 = arith.constant 0 : index
    %c0_3 = arith.constant 0 : index
    %4 = vector.load %arg3[%c0_2, %c0_3] : memref<1x256xf32, #tpu.memory_space<vmem>>, vector<1x256xf32>
    %c0_4 = arith.constant 0 : index
    %c0_5 = arith.constant 0 : index
    %5 = vector.load %arg8[%c0_4, %c0_5] : memref<2x256xf32, #tpu.memory_space<vmem>>, vector<2x256xf32>
    %6 = vector.shape_cast %4 : vector<1x256xf32> to vector<1x256xf32>
    %7 = vector.broadcast %6 : vector<1x256xf32> to vector<2x256xf32>
    %c0_i32_6 = arith.constant 0 : i32
    %8 = arith.index_cast %c0_i32_6 : i32 to index
    %c0_7 = arith.constant 0 : index
    %c0_8 = arith.constant 0 : index
    %9 = vector.load %arg1[%8, %c0_7, %c0_8] : memref<2x2x768xbf16, #tpu.memory_space<vmem>>, vector<1x2x768xbf16>
    %10 = vector.shape_cast %9 : vector<1x2x768xbf16> to vector<2x768xbf16>
    %11 = arith.extf %10 : vector<2x768xbf16> to vector<2x768xf32>
    %12 = arith.truncf %5 : vector<2x256xf32> to vector<2x256xbf16>
    %cst = arith.constant dense<0.000000e+00> : vector<2x768xf32>
    %13 = tpu.matmul %12, %3, %cst {dimension_numbers = #tpu.dot_dimension_numbers<[1], [0], [0], [1], [0, 0, 1, 1], [], []>} : vector<2x256xbf16>, vector<256x768xbf16>, vector<2x768xf32> -> vector<2x768xf32>
    %14 = vector.extract_strided_slice %11 {offsets = [0, 0], sizes = [2, 256], strides = [1, 1]} : vector<2x768xf32> to vector<2x256xf32>
    %15 = vector.extract_strided_slice %13 {offsets = [0, 0], sizes = [2, 256], strides = [1, 1]} : vector<2x768xf32> to vector<2x256xf32>
    %16 = arith.addf %14, %15 : vector<2x256xf32>
    %17 = arith.negf %16 : vector<2x256xf32>
    %18 = math.exp %17 : vector<2x256xf32>
    %cst_9 = arith.constant 1.000000e+00 : f32
    %19 = vector.broadcast %cst_9 : f32 to vector<2x256xf32>
    %20 = arith.addf %19, %18 : vector<2x256xf32>
    %21 = arith.divf %19, %20 : vector<2x256xf32>
    %22 = vector.extract_strided_slice %11 {offsets = [0, 256], sizes = [2, 256], strides = [1, 1]} : vector<2x768xf32> to vector<2x256xf32>
    %23 = vector.extract_strided_slice %13 {offsets = [0, 256], sizes = [2, 256], strides = [1, 1]} : vector<2x768xf32> to vector<2x256xf32>
    %24 = arith.addf %22, %23 : vector<2x256xf32>
    %25 = arith.negf %24 : vector<2x256xf32>
    %26 = math.exp %25 : vector<2x256xf32>
    %cst_10 = arith.constant 1.000000e+00 : f32
    %27 = vector.broadcast %cst_10 : f32 to vector<2x256xf32>
    %28 = arith.addf %27, %26 : vector<2x256xf32>
    %29 = arith.divf %27, %28 : vector<2x256xf32>
    %30 = vector.extract_strided_slice %11 {offsets = [0, 512], sizes = [2, 256], strides = [1, 1]} : vector<2x768xf32> to vector<2x256xf32>
    %31 = vector.extract_strided_slice %13 {offsets = [0, 512], sizes = [2, 256], strides = [1, 1]} : vector<2x768xf32> to vector<2x256xf32>
    %32 = arith.addf %31, %7 : vector<2x256xf32>
    %33 = arith.mulf %21, %32 : vector<2x256xf32>
    %34 = arith.addf %30, %33 : vector<2x256xf32>
    %35 = math.tanh %34 : vector<2x256xf32>
    %cst_11 = arith.constant 1.000000e+00 : f32
    %36 = vector.broadcast %cst_11 : f32 to vector<2x256xf32>
    %37 = arith.subf %36, %29 : vector<2x256xf32>
    %38 = arith.mulf %37, %35 : vector<2x256xf32>
    %39 = arith.mulf %29, %5 : vector<2x256xf32>
    %40 = arith.addf %38, %39 : vector<2x256xf32>
    %c1_i32 = arith.constant 1 : i32
    %41 = arith.index_cast %c1_i32 : i32 to index
    %c0_12 = arith.constant 0 : index
    %c0_13 = arith.constant 0 : index
    %42 = vector.load %arg1[%41, %c0_12, %c0_13] : memref<2x2x768xbf16, #tpu.memory_space<vmem>>, vector<1x2x768xbf16>
    %43 = vector.shape_cast %42 : vector<1x2x768xbf16> to vector<2x768xbf16>
    %44 = arith.extf %43 : vector<2x768xbf16> to vector<2x768xf32>
    %45 = arith.truncf %40 : vector<2x256xf32> to vector<2x256xbf16>
    %cst_14 = arith.constant dense<0.000000e+00> : vector<2x768xf32>
    %46 = tpu.matmul %45, %3, %cst_14 {dimension_numbers = #tpu.dot_dimension_numbers<[1], [0], [0], [1], [0, 0, 1, 1], [], []>} : vector<2x256xbf16>, vector<256x768xbf16>, vector<2x768xf32> -> vector<2x768xf32>
    %47 = vector.extract_strided_slice %44 {offsets = [0, 0], sizes = [2, 256], strides = [1, 1]} : vector<2x768xf32> to vector<2x256xf32>
    %48 = vector.extract_strided_slice %46 {offsets = [0, 0], sizes = [2, 256], strides = [1, 1]} : vector<2x768xf32> to vector<2x256xf32>
    %49 = arith.addf %47, %48 : vector<2x256xf32>
    %50 = arith.negf %49 : vector<2x256xf32>
    %51 = math.exp %50 : vector<2x256xf32>
    %cst_15 = arith.constant 1.000000e+00 : f32
    %52 = vector.broadcast %cst_15 : f32 to vector<2x256xf32>
    %53 = arith.addf %52, %51 : vector<2x256xf32>
    %54 = arith.divf %52, %53 : vector<2x256xf32>
    %55 = vector.extract_strided_slice %44 {offsets = [0, 256], sizes = [2, 256], strides = [1, 1]} : vector<2x768xf32> to vector<2x256xf32>
    %56 = vector.extract_strided_slice %46 {offsets = [0, 256], sizes = [2, 256], strides = [1, 1]} : vector<2x768xf32> to vector<2x256xf32>
    %57 = arith.addf %55, %56 : vector<2x256xf32>
    %58 = arith.negf %57 : vector<2x256xf32>
    %59 = math.exp %58 : vector<2x256xf32>
    %cst_16 = arith.constant 1.000000e+00 : f32
    %60 = vector.broadcast %cst_16 : f32 to vector<2x256xf32>
    %61 = arith.addf %60, %59 : vector<2x256xf32>
    %62 = arith.divf %60, %61 : vector<2x256xf32>
    %63 = vector.extract_strided_slice %44 {offsets = [0, 512], sizes = [2, 256], strides = [1, 1]} : vector<2x768xf32> to vector<2x256xf32>
    %64 = vector.extract_strided_slice %46 {offsets = [0, 512], sizes = [2, 256], strides = [1, 1]} : vector<2x768xf32> to vector<2x256xf32>
    %65 = arith.addf %64, %7 : vector<2x256xf32>
    %66 = arith.mulf %54, %65 : vector<2x256xf32>
    %67 = arith.addf %63, %66 : vector<2x256xf32>
    %68 = math.tanh %67 : vector<2x256xf32>
    %cst_17 = arith.constant 1.000000e+00 : f32
    %69 = vector.broadcast %cst_17 : f32 to vector<2x256xf32>
    %70 = arith.subf %69, %62 : vector<2x256xf32>
    %71 = arith.mulf %70, %68 : vector<2x256xf32>
    %72 = arith.mulf %62, %40 : vector<2x256xf32>
    %73 = arith.addf %71, %72 : vector<2x256xf32>
    %c2_i32 = arith.constant 2 : i32
    %c0_18 = arith.constant 0 : index
    %c0_19 = arith.constant 0 : index
    %74 = vector.load %arg8[%c0_18, %c0_19] : memref<2x256xf32, #tpu.memory_space<vmem>>, vector<2x256xf32>
    tpu.vector_store %arg8[%c0_18, %c0_19], %73 {strides = array<i32>} : memref<2x256xf32, #tpu.memory_space<vmem>>, vector<2x256xf32>,
    %c3_i32 = arith.constant 3 : i32
    %75 = arith.cmpi eq, %arg0, %c3_i32 : i32
    %76 = arith.extui %75 : i1 to i32
    %c0_i32_20 = arith.constant 0 : i32
    %77 = arith.cmpi ne, %76, %c0_i32_20 : i32
    scf.if %77 {
      %78 = vector.extract_strided_slice %73 {offsets = [0, 0], sizes = [2, 128], strides = [1, 1]} : vector<2x256xf32> to vector<2x128xf32>
      %79 = vector.extract_strided_slice %73 {offsets = [0, 128], sizes = [2, 128], strides = [1, 1]} : vector<2x256xf32> to vector<2x128xf32>
      %80 = arith.addf %78, %79 : vector<2x128xf32>
      %cst_21 = arith.constant 5.000000e-01 : f32
      %81 = vector.broadcast %cst_21 : f32 to vector<2x128xf32>
      %82 = arith.mulf %81, %80 : vector<2x128xf32>
      %c0_22 = arith.constant 0 : index
      %c0_23 = arith.constant 0 : index
      %83 = vector.load %arg6[%c0_22, %c0_23] : memref<2x128xf32, #tpu.memory_space<vmem>>, vector<2x128xf32>
      tpu.vector_store %arg6[%c0_22, %c0_23], %82 {strides = array<i32>} : memref<2x128xf32, #tpu.memory_space<vmem>>, vector<2x128xf32>,
      %c0_24 = arith.constant 0 : index
      %c0_25 = arith.constant 0 : index
      %84 = vector.load %arg4[%c0_24, %c0_25] : memref<128x128xf32, #tpu.memory_space<vmem>>, vector<128x128xf32>
      %cst_26 = arith.constant dense<0.000000e+00> : vector<2x128xf32>
      %85 = tpu.matmul %82, %84, %cst_26 {dimension_numbers = #tpu.dot_dimension_numbers<[1], [0], [0], [1], [0, 0, 1, 1], [], []>} : vector<2x128xf32>, vector<128x128xf32>, vector<2x128xf32> -> vector<2x128xf32>
      %c0_27 = arith.constant 0 : index
      %c0_28 = arith.constant 0 : index
      %86 = vector.load %arg5[%c0_27, %c0_28] : memref<1x128xf32, #tpu.memory_space<vmem>>, vector<1x128xf32>
      %87 = vector.broadcast %86 : vector<1x128xf32> to vector<2x128xf32>
      %88 = arith.addf %85, %87 : vector<2x128xf32>
      %c0_29 = arith.constant 0 : index
      %c0_30 = arith.constant 0 : index
      %89 = vector.load %arg7[%c0_29, %c0_30] : memref<2x128xf32, #tpu.memory_space<vmem>>, vector<2x128xf32>
      tpu.vector_store %arg7[%c0_29, %c0_30], %88 {strides = array<i32>} : memref<2x128xf32, #tpu.memory_space<vmem>>, vector<2x128xf32>,
    } else {
    }
    return
  }
  func.func @transform_0(%arg0: i32) -> (i32, i32, i32) {
    %c0_i32 = arith.constant 0 : i32
    %c0_i32_0 = arith.constant 0 : i32
    %c0_i32_1 = arith.constant 0 : i32
    return %arg0, %c0_i32, %c0_i32_0 : i32, i32, i32
  }
  func.func @transform_1(%arg0: i32) -> (i32, i32) {
    %c0_i32 = arith.constant 0 : i32
    %c0_i32_0 = arith.constant 0 : i32
    %c0_i32_1 = arith.constant 0 : i32
    return %c0_i32, %c0_i32_0 : i32, i32
  }
  func.func @transform_2(%arg0: i32) -> (i32, i32) {
    %c0_i32 = arith.constant 0 : i32
    %c0_i32_0 = arith.constant 0 : i32
    %c0_i32_1 = arith.constant 0 : i32
    return %c0_i32, %c0_i32_0 : i32, i32
  }
  func.func @transform_3(%arg0: i32) -> (i32, i32) {
    %c0_i32 = arith.constant 0 : i32
    %c0_i32_0 = arith.constant 0 : i32
    %c0_i32_1 = arith.constant 0 : i32
    return %c0_i32, %c0_i32_0 : i32, i32
  }
  func.func @transform_4(%arg0: i32) -> (i32, i32) {
    %c0_i32 = arith.constant 0 : i32
    %c0_i32_0 = arith.constant 0 : i32
    %c0_i32_1 = arith.constant 0 : i32
    return %c0_i32, %c0_i32_0 : i32, i32
  }
  func.func @transform_5(%arg0: i32) -> (i32, i32) {
    %c0_i32 = arith.constant 0 : i32
    %c0_i32_0 = arith.constant 0 : i32
    %c0_i32_1 = arith.constant 0 : i32
    return %c0_i32, %c0_i32_0 : i32, i32
  }
  func.func @transform_6(%arg0: i32) -> (i32, i32) {
    %c0_i32 = arith.constant 0 : i32
    %c0_i32_0 = arith.constant 0 : i32
    %c0_i32_1 = arith.constant 0 : i32
    return %c0_i32, %c0_i32_0 : i32, i32
  }
}

</mosaic_0001>

<bundles_post_ra>
// kernel: bigru_forward.2
= control target key start
LH: loop header
LB: loop body
LE: loop exit
PB: predicated region body
PF: predicated region fallthrough
CT: control target
= control target key end

     0   :  { %s1598_s12 = smov 0   ;;  %s2351_s0 = inlined_call_operand.vmem [shape: bf16[8,2,768], index: 0, kind: input, shape index: {}]   ;;  %s2352_s1 = inlined_call_operand.vmem [shape: bf16[256,768], index: 1, kind: input, shape index: {}]   ;;  %s2353_s2 = inlined_call_operand.vmem [shape: f32[1,256], index: 2, kind: input, shape index: {}]   ;;  %s2354_s3 = inlined_call_operand.vmem [shape: bf16[8,2,256], index: 3, kind: output, shape index: {}]  }
   0x1 LB: > { %s1274_s13 = sadd.s32 4294967295, %s1573_s12   ;;  %p1278_p0 = scmp.ge.s32.totalorder %s1573_s12, 1  ;;  %s1573_s12 = sphi %s1598_s12, %s13_s12  }
   0x2   : > { %p138_p1 = scmp.lt.s32.totalorder %s1573_s12, 5 }
   0x4   : > { %p139_p2 = pnand %p1278_p0, %p138_p1 }
   0x6   : > { %142 = sbr.rel (%p139_p2) target bundleno = 707 (0x2c3), region = 32 }
   0xd   : > { %s1279_s14 = sshll.u32 %s1274_s13, 1  ;;  %p1282_p4 = scmp.ne.s32.totalorder %s1274_s13, 0 }
   0xe   : > { %p163_p3 = scmp.lt.s32.totalorder %s1279_s14, 7  ;;  %v1575_v0 = vmov (!%p1282_p4), 0.0  }
   0xf   : > { %177 = sbr.rel (%p1282_p4) target bundleno = 22 (0x16), region = 36  ;;  %178 = vst [vmem:[#allocation2] sm:$0xf] (!%p1282_p4), %v1575_v0 }
  0x10   : > { %s2412_s14 = smov (!%p163_p3, %s1279_s14), 7 }
  0x11   : > { %s1391_s15 = smul.u32 6, %s2412_s14  ;;  %s1281_s16 = sshll.u32 %s2412_s14, 1 }
  0x12   : > { %s1609_s19 = scalar_lea.vmem %s2354_s3, %s1281_s16 }
  0x13   : > { %s1614_s22 = scalar_lea.vmem %s2351_s0, %s1391_s15 }
  0x16 PF: > { %v1619_v1 = vld [vmem:[%s2352_s1 + $0x4] ss:$24 sps:$4 sm:$0xff]   ;;  %v1624_v2 = vld [vmem:[%s2352_s1] ss:$24 sps:$4 sm:$0xff]   ;;  %v1630_v3 = vld [vmem:[%s2352_s1 + $0x34] ss:$24 sps:$4 sm:$0xff]   ;;  %v278_v11 = vlaneseq }
  0x17   : > { %784 = vmatprep.subr.bf16.mxu0 %v1619_v1  ;;  %v1636_v4 = vld [vmem:[%s2352_s1 + $0x30] ss:$24 sps:$4 sm:$0xff]   ;;  %v1642_v5 = vld [vmem:[%s2352_s1 + $0x64] ss:$24 sps:$4 sm:$0xff]   ;;  %v1648_v6 = vld [vmem:[%s2352_s1 + $0x60] ss:$24 sps:$4 sm:$0xff]  }
  0x18   : > { %785 = vmatpush1.bf16.msra.mxu0 %v1624_v2  ;;  %v1654_v7 = vld [vmem:[%s2352_s1 + $0x94] ss:$24 sps:$4 sm:$0xff]   ;;  %v1660_v8 = vld [vmem:[%s2352_s1 + $0x90] ss:$24 sps:$4 sm:$0xff]   ;;  %v1666_v9 = vld [vmem:[%s2352_s1 + $0xc4] ss:$24 sps:$4 sm:$0xff]  }
  0x19   : > { %786 = vmatprep.subr.bf16.mxu0 %v1630_v3  ;;  %v1672_v10 = vld [vmem:[%s2352_s1 + $0xc0] ss:$24 sps:$4 sm:$0xff]   ;;  %v1576_v12 = vmov 1983009808   ;;  %v1678_v14 = vld [vmem:[%s2352_s1 + $0xf4] ss:$24 sps:$4 sm:$0xff]  }
  0x1a   : > { %v293_v13 = vunpack.c.l.s4 %v1576_v12  ;;  %v1683_v15 = vld [vmem:[%s2352_s1 + $0xc] ss:$24 sps:$4 sm:$0xff]   ;;  %v1688_v16 = vld [vmem:[%s2352_s1 + $0x8] ss:$24 sps:$4 sm:$0xff]   ;;  %v1697_v18 = vshrl.u32 %v278_v11, 7 }
  0x1b   : > { %v1694_v17 = vld [vmem:[%s2352_s1 + $0xf0] ss:$24 sps:$4 sm:$0xff]   ;;  %825 = vmatprep.subr.bf16.mxu1 %v1683_v15  ;;  %v1703_v20 = vld [vmem:[%s2352_s1 + $0x124] ss:$24 sps:$4 sm:$0xff]   ;;  %v1721_v23 = vld [vmem:[%s2352_s1 + $0x120] ss:$24 sps:$4 sm:$0xff]  }
  0x1c   : > { %787 = vmatpush1.bf16.msra.mxu0 %v1636_v4  ;;  %2375 = vst [vmem:[#allocation3_spill] sm:$0xff] %v1697_v18  ;;  %v294_v19 = vunpack.c.0.s8 %v293_v13  ;;  %826 = vmatpush1.bf16.msra.mxu1 %v1688_v16  ;;  %v1709_v21 = vld [vmem:[%s2352_s1 + $0x3c] ss:$24 sps:$4 sm:$0xff]   ;;  %v1714_v22 = vld [vmem:[%s2352_s1 + $0x38] ss:$24 sps:$4 sm:$0xff]  }
  0x1d   : > { %788 = vmatprep.subr.bf16.mxu0 %v1642_v5  ;;  %827 = vmatprep.subr.bf16.mxu1 %v1709_v21  ;;  %v1726_v24 = vld [vmem:[%s2352_s1 + $0x154] ss:$24 sps:$4 sm:$0xff]   ;;  %v1741_v27 = vld [vmem:[%s2352_s1 + $0x68] ss:$24 sps:$4 sm:$0xff]   ;;  %v1760_v31 = vld [vmem:[%s2352_s1 + $0x184] ss:$24 sps:$4 sm:$0xff]  }
  0x1e   : > { %v1731_v25 = vld [vmem:[%s2352_s1 + $0x6c] ss:$24 sps:$4 sm:$0xff]   ;;  %v1734_v26 = vsub.s32 %v294_v19, %v1697_v18  ;;  %v1747_v28 = vld [vmem:[%s2352_s1 + $0x9c] ss:$24 sps:$4 sm:$0xff]   ;;  %v1752_v29 = vld [vmem:[%s2352_s1 + $0x150] ss:$24 sps:$4 sm:$0xff]  }
  0x1f   : > { %v1754_v30 = vld [vmem:[#allocation2] sm:$0xf]  ;;  %v1771_v33 = vld [vmem:[%s2352_s1 + $0x98] ss:$24 sps:$4 sm:$0xff]   ;;  %v1779_v35 = vld [vmem:[%s2352_s1 + $0xcc] ss:$24 sps:$4 sm:$0xff]  }
  0x20   : > { %789 = vmatpush1.bf16.msra.mxu0 %v1648_v6  ;;  %2376 = vst [vmem:[#allocation4_spill] sm:$0xff] %v1734_v26  ;;  %828 = vmatpush1.bf16.msra.mxu1 %v1714_v22  ;;  %2377 = vst [vmem:[#allocation5_spill] sm:$0xff] %v1754_v30  ;;  %v1764_v32 = vrot.slane %v1754_v30, %v1734_v26  ;;  %v1785_v36 = vld [vmem:[%s2352_s1 + $0x180] ss:$24 sps:$4 sm:$0xff]   ;;  %v1790_v37 = vld [vmem:[%s2352_s1 + $0x1b4] ss:$24 sps:$4 sm:$0xff]  }
  0x21   : > { %790 = vmatprep.subr.bf16.mxu0 %v1654_v7  ;;  %829 = vmatprep.subr.bf16.mxu1 %v1731_v25  ;;  %v1799_v39 = vld [vmem:[%s2352_s1 + $0xc8] ss:$24 sps:$4 sm:$0xff]   ;;  %v1806_v40 = vld [vmem:[%s2352_s1 + $0xfc] ss:$24 sps:$4 sm:$0xff]   ;;  %v1825_v43 = vld [vmem:[%s2352_s1 + $0xf8] ss:$24 sps:$4 sm:$0xff]  }
  0x22   : > { %v299_v34 = vcombine.high %v1764_v32, %v1764_v32  ;;  %v1811_v41 = vld [vmem:[%s2352_s1 + $0x1b0] ss:$24 sps:$4 sm:$0xff]   ;;  %v1818_v42 = vld [vmem:[%s2352_s1 + $0x1e4] ss:$24 sps:$4 sm:$0xff]   ;;  %v1837_v45 = vld [vmem:[%s2352_s1 + $0x1e0] ss:$24 sps:$4 sm:$0xff]  }
  0x23   : > { %v1831_v44 = vld [vmem:[%s2352_s1 + $0x12c] ss:$24 sps:$4 sm:$0xff]   ;;  %v1849_v47 = vld [vmem:[%s2352_s1 + $0x128] ss:$24 sps:$4 sm:$0xff]   ;;  %v1855_v48 = vld [vmem:[%s2352_s1 + $0x15c] ss:$24 sps:$4 sm:$0xff]  }
  0x24   : > { %791 = vmatpush1.bf16.msra.mxu0 %v1660_v8  ;;  %830 = vmatpush1.bf16.msra.mxu1 %v1741_v27  ;;  %v1792_v38 = vpack.c.bf16 %v299_v34, %v299_v34  ;;  %v1842_v46 = vld [vmem:[%s2352_s1 + $0x214] ss:$24 sps:$4 sm:$0xff]   ;;  %v1860_v49 = vld [vmem:[%s2352_s1 + $0x210] ss:$24 sps:$4 sm:$0xff]   ;;  %v1866_v50 = vld [vmem:[%s2352_s1 + $0x244] ss:$24 sps:$4 sm:$0xff]   ;;  %v1979_v34 = vpack.c.bf16 %v1764_v32, %v1764_v32 }
  0x25   : > { %792 = vmatprep.subr.bf16.mxu0 %v1666_v9  ;;  %831 = vmatprep.subr.bf16.mxu1 %v1747_v28  ;;  %v1873_v51 = vld [vmem:[%s2352_s1 + $0x158] ss:$24 sps:$4 sm:$0xff]   ;;  %v1879_v52 = vld [vmem:[%s2352_s1 + $0x18c] ss:$24 sps:$4 sm:$0xff]   ;;  %v1897_v55 = vld [vmem:[%s2352_s1 + $0x188] ss:$24 sps:$4 sm:$0xff]  }
  0x26   : > { %816 = vmatprep.mubr.bf16.mxu0 %v1792_v38  ;;  %857 = vmatprep.mubr.bf16.mxu1 %v1792_v38  ;;  %v1885_v53 = vld [vmem:[%s2352_s1 + $0x240] ss:$24 sps:$4 sm:$0xff]   ;;  %v1890_v54 = vld [vmem:[%s2352_s1 + $0x274] ss:$24 sps:$4 sm:$0xff]   ;;  %v1908_v57 = vld [vmem:[%s2352_s1 + $0x270] ss:$24 sps:$4 sm:$0xff]  }
  0x27   : > { %v1903_v56 = vld [vmem:[%s2352_s1 + $0x1bc] ss:$24 sps:$4 sm:$0xff]   ;;  %v1921_v59 = vld [vmem:[%s2352_s1 + $0x1b8] ss:$24 sps:$4 sm:$0xff]   ;;  %v1927_v60 = vld [vmem:[%s2352_s1 + $0x1ec] ss:$24 sps:$4 sm:$0xff]  }
  0x28   : > { %793 = vmatpush1.bf16.msra.mxu0 %v1672_v10  ;;  %832 = vmatpush1.bf16.msra.mxu1 %v1771_v33  ;;  %v1914_v58 = vld [vmem:[%s2352_s1 + $0x2a4] ss:$24 sps:$4 sm:$0xff]   ;;  %v1933_v61 = vld [vmem:[%s2352_s1 + $0x2a0] ss:$24 sps:$4 sm:$0xff]   ;;  %v1938_v62 = vld [vmem:[%s2352_s1 + $0x2d4] ss:$24 sps:$4 sm:$0xff]  }
  0x29   : > { %794 = vmatprep.subr.bf16.mxu0 %v1678_v14  ;;  %833 = vmatprep.subr.bf16.mxu1 %v1779_v35  ;;  %v1945_v63 = vld [vmem:[%s2352_s1 + $0x1e8] ss:$24 sps:$4 sm:$0xff]   ;;  %v1951_v0 = vld [vmem:[%s2352_s1 + $0x21c] ss:$24 sps:$4 sm:$0xff]   ;;  %v1969_v13 = vld [vmem:[%s2352_s1 + $0x218] ss:$24 sps:$4 sm:$0xff]  }
  0x2a   : > { %v1956_v11 = vld [vmem:[%s2352_s1 + $0x2d0] ss:$24 sps:$4 sm:$0xff]   ;;  %v1962_v12 = vld [vmem:[%s2352_s1 + $0x14] ss:$24 sps:$4 sm:$0xff]   ;;  %2378 = vst [vmem:[#allocation6_spill] sm:$0xff] %v1969_v13 }
  0x2b   : > { %v1975_v19 = vld [vmem:[%s2352_s1 + $0x24c] ss:$24 sps:$4 sm:$0xff]   ;;  %v1985_v30 = vld [vmem:[%s2352_s1 + $0x10] ss:$24 sps:$4 sm:$0xff]   ;;  %v2003_v26 = vld [vmem:[%s2352_s1 + $0x27c] ss:$24 sps:$4 sm:$0xff]  }
  0x2c   : > { %795 = vmatpush1.bf16.msra.mxu0 %v1694_v17  ;;  %834 = vmatpush1.bf16.msra.mxu1 %v1799_v39  ;;  %2379 = vst [vmem:[#allocation7_spill] sm:$0xff] %v1975_v19  ;;  %2380 = vst [vmem:[#allocation8_spill] sm:$0xff] %v1985_v30  ;;  %v1991_v18 = vld [vmem:[%s2352_s1 + $0x44] ss:$24 sps:$4 sm:$0xff]   ;;  %v1997_v32 = vld [vmem:[%s2352_s1 + $0x248] ss:$24 sps:$4 sm:$0xff]  }
  0x2d   : > { %796 = vmatprep.subr.bf16.mxu0 %v1703_v20  ;;  %835 = vmatprep.subr.bf16.mxu1 %v1806_v40  ;;  %2381 = vst [vmem:[#allocation9_spill] sm:$0xff] %v1991_v18  ;;  %2382 = vst [vmem:[#allocation10_spill] sm:$0xff] %v1997_v32 }
  0x2e   : > { %2383 = vst [vmem:[#allocation11_spill] sm:$0xff] %v2003_v26 }
  0x30   : > { %797 = vmatpush1.bf16.msra.mxu0 %v1721_v23  ;;  %836 = vmatpush1.bf16.msra.mxu1 %v1825_v43 }
  0x31   : > { %798 = vmatprep.subr.bf16.mxu0 %v1726_v24  ;;  %837 = vmatprep.subr.bf16.mxu1 %v1831_v44 }
  0x34   : > { %799 = vmatpush1.bf16.msra.mxu0 %v1752_v29  ;;  %838 = vmatpush1.bf16.msra.mxu1 %v1849_v47 }
  0x35   : > { %800 = vmatprep.subr.bf16.mxu0 %v1760_v31  ;;  %839 = vmatprep.subr.bf16.mxu1 %v1855_v48 }
  0x38   : > { %801 = vmatpush1.bf16.msra.mxu0 %v1785_v36  ;;  %840 = vmatpush1.bf16.msra.mxu1 %v1873_v51 }
  0x39   : > { %802 = vmatprep.subr.bf16.mxu0 %v1790_v37  ;;  %841 = vmatprep.subr.bf16.mxu1 %v1879_v52 }
  0x3c   : > { %803 = vmatpush1.bf16.msra.mxu0 %v1811_v41  ;;  %842 = vmatpush1.bf16.msra.mxu1 %v1897_v55 }
  0x3d   : > { %804 = vmatprep.subr.bf16.mxu0 %v1818_v42  ;;  %843 = vmatprep.subr.bf16.mxu1 %v1903_v56 }
  0x40   : > { %805 = vmatpush1.bf16.msra.mxu0 %v1837_v45  ;;  %844 = vmatpush1.bf16.msra.mxu1 %v1921_v59 }
  0x41   : > { %806 = vmatprep.subr.bf16.mxu0 %v1842_v46  ;;  %845 = vmatprep.subr.bf16.mxu1 %v1927_v60 }
  0x44   : > { %807 = vmatpush1.bf16.msra.mxu0 %v1860_v49  ;;  %846 = vmatpush1.bf16.msra.mxu1 %v1945_v63 }
  0x45   : > { %808 = vmatprep.subr.bf16.mxu0 %v1866_v50  ;;  %847 = vmatprep.subr.bf16.mxu1 %v1951_v0 }
  0x48   : > { %809 = vmatpush1.bf16.msra.mxu0 %v1885_v53  ;;  %848 = vmatpush1.bf16.msra.mxu1 %v1969_v13  ;;  %v2010_v13 = vld [vmem:[%s2352_s1 + $0x40] ss:$24 sps:$4 sm:$0xff]  }
  0x49   : > { %810 = vmatprep.subr.bf16.mxu0 %v1890_v54  ;;  %849 = vmatprep.subr.bf16.mxu1 %v1975_v19  ;;  %2384 = vst [vmem:[#allocation12_spill] sm:$0xff] %v2010_v13  ;;  %v2017_v19 = vld [vmem:[%s2352_s1 + $0x74] ss:$24 sps:$4 sm:$0xff]  }
  0x4a   : > { %2385 = vst [vmem:[#allocation13_spill] sm:$0xff] %v2017_v19 }
  0x4c   : > { %811 = vmatpush1.bf16.msra.mxu0 %v1908_v57  ;;  %850 = vmatpush1.bf16.msra.mxu1 %v1997_v32  ;;  %v2041_v32 = vld [vmem:[%s2352_s1 + $0xa4] ss:$24 sps:$4 sm:$0xff]  }
  0x4d   : > { %812 = vmatprep.subr.bf16.mxu0 %v1914_v58  ;;  %851 = vmatprep.subr.bf16.mxu1 %v2003_v26  ;;  %2389 = vst [vmem:[#allocation17_spill] sm:$0xff] %v2041_v32  ;;  %v2047_v26 = vld [vmem:[%s2352_s1 + $0x2a8] ss:$24 sps:$4 sm:$0xff]  }
  0x50   : > { %813 = vmatpush1.bf16.msra.mxu0 %v1933_v61 }
  0x51   : > { %814 = vmatprep.subr.bf16.mxu0 %v1938_v62 }
  0x54   : > { %815 = vmatpush1.bf16.msra.mxu0 %v1956_v11 }
  0x55   : > { %866 = vmatprep.subr.bf16.mxu0 %v1962_v12 }
  0x57   : > { %817 = vmatmul.mubr.bf16.vlgmr.msra.gmra.mrb[0].mxu0 %v1979_v34 }
  0x58   : > { %867 = vmatpush1.bf16.msra.mxu0 %v1985_v30  ;;  %898 = vmatprep.mubr.bf16.mxu0 %v1792_v38  ;;  %v2023_v30 = vld [vmem:[%s2352_s1 + $0x278] ss:$24 sps:$4 sm:$0xff]   ;;  %v2029_v38 = vld [vmem:[%s2352_s1 + $0x2ac] ss:$24 sps:$4 sm:$0xff]  }
  0x59   : > { %868 = vmatprep.subr.bf16.mxu0 %v1991_v18  ;;  %2386 = vst [vmem:[#allocation14_spill] sm:$0xff] %v2023_v30  ;;  %2387 = vst [vmem:[#allocation15_spill] sm:$0xff] %v2029_v38  ;;  %v2035_v18 = vld [vmem:[%s2352_s1 + $0x70] ss:$24 sps:$4 sm:$0xff]   ;;  %852 = vmatpush1.bf16.msra.mxu1 %v2023_v30  ;;  %v2065_v30 = vld [vmem:[%s2352_s1 + $0xd4] ss:$24 sps:$4 sm:$0xff]  }
  0x5a   : > { %2388 = vst [vmem:[#allocation16_spill] sm:$0xff] %v2035_v18  ;;  %853 = vmatprep.subr.bf16.mxu1 %v2029_v38  ;;  %2391 = vst [vmem:[#allocation19_spill] sm:$0xff] %v2065_v30  ;;  %v2071_v38 = vld [vmem:[%s2352_s1 + $0x2d8] ss:$24 sps:$4 sm:$0xff]  }
  0x5c   : > { %869 = vmatpush1.bf16.msra.mxu0 %v2010_v13  ;;  %v2053_v13 = vld [vmem:[%s2352_s1 + $0x2dc] ss:$24 sps:$4 sm:$0xff]  }
  0x5d   : > { %870 = vmatprep.subr.bf16.mxu0 %v2017_v19  ;;  %v2059_v19 = vld [vmem:[%s2352_s1 + $0xa0] ss:$24 sps:$4 sm:$0xff]   ;;  %854 = vmatpush1.bf16.msra.mxu1 %v2047_v26 }
  0x5e   : > { %2390 = vst [vmem:[#allocation18_spill] sm:$0xff] %v2059_v19  ;;  %855 = vmatprep.subr.bf16.mxu1 %v2053_v13 }
  0x60   : > { %871 = vmatpush1.bf16.msra.mxu0 %v2035_v18  ;;  %v2084_v18 = vld [vmem:[%s2352_s1 + $0x104] ss:$24 sps:$4 sm:$0xff]  }
  0x61   : > { %872 = vmatprep.subr.bf16.mxu0 %v2041_v32  ;;  %v2078_v32 = vld [vmem:[%s2352_s1 + $0xd0] ss:$24 sps:$4 sm:$0xff]   ;;  %2392 = vst [vmem:[#allocation20_spill] sm:$0xff] %v2084_v18  ;;  %856 = vmatpush1.bf16.msra.mxu1 %v2071_v38 }
  0x62   : > { %1002 = vmatprep.subr.bf16.mxu1 %v1619_v1  ;;  %v2107_v1 = vld [vmem:[%s2352_s1 + $0x130] ss:$24 sps:$4 sm:$0xff]  }
  0x64   : > { %873 = vmatpush1.bf16.msra.mxu0 %v2059_v19  ;;  %v2092_v19 = vld [vmem:[%s2352_s1 + $0x100] ss:$24 sps:$4 sm:$0xff]   ;;  %858 = vmatmul.mubr.bf16.vlgmr.msra.gmra.mrb[0].mxu1 %v1979_v34 }
  0x65   : > { %874 = vmatprep.subr.bf16.mxu0 %v2065_v30  ;;  %v2099_v30 = vld [vmem:[%s2352_s1 + $0x134] ss:$24 sps:$4 sm:$0xff]   ;;  %1003 = vmatpush1.bf16.msra.mxu1 %v1624_v2  ;;  %v2121_v2 = vld [vmem:[%s2352_s1 + $0x160] ss:$24 sps:$4 sm:$0xff]  }
  0x66   : > { %1004 = vmatprep.subr.bf16.mxu1 %v1630_v3  ;;  %v2127_v3 = vld [vmem:[%s2352_s1 + $0x194] ss:$24 sps:$4 sm:$0xff]  }
  0x68   : > { %875 = vmatpush1.bf16.msra.mxu0 %v2078_v32 }
  0x69   : > { %876 = vmatprep.subr.bf16.mxu0 %v2084_v18  ;;  %v2113_v18 = vld [vmem:[%s2352_s1 + $0x164] ss:$24 sps:$4 sm:$0xff]   ;;  %1005 = vmatpush1.bf16.msra.mxu1 %v1636_v4  ;;  %v2135_v4 = vld [vmem:[%s2352_s1 + $0x190] ss:$24 sps:$4 sm:$0xff]  }
  0x6a   : > { %1006 = vmatprep.subr.bf16.mxu1 %v1642_v5  ;;  %v2141_v5 = vld [vmem:[%s2352_s1 + $0x1c4] ss:$24 sps:$4 sm:$0xff]  }
  0x6c   : > { %877 = vmatpush1.bf16.msra.mxu0 %v2092_v19 }
  0x6d   : > { %878 = vmatprep.subr.bf16.mxu0 %v2099_v30  ;;  %1007 = vmatpush1.bf16.msra.mxu1 %v1648_v6  ;;  %v2149_v6 = vld [vmem:[%s2352_s1 + $0x1c0] ss:$24 sps:$4 sm:$0xff]  }
  0x6e   : > { %1008 = vmatprep.subr.bf16.mxu1 %v1654_v7  ;;  %v2155_v7 = vld [vmem:[%s2352_s1 + $0x1f4] ss:$24 sps:$4 sm:$0xff]  }
  0x70   : > { %879 = vmatpush1.bf16.msra.mxu0 %v2107_v1 }
  0x71   : > { %880 = vmatprep.subr.bf16.mxu0 %v2113_v18  ;;  %1009 = vmatpush1.bf16.msra.mxu1 %v1660_v8  ;;  %v2163_v8 = vld [vmem:[%s2352_s1 + $0x1f0] ss:$24 sps:$4 sm:$0xff]  }
  0x72   : > { %1010 = vmatprep.subr.bf16.mxu1 %v1666_v9  ;;  %v2169_v9 = vld [vmem:[%s2352_s1 + $0x224] ss:$24 sps:$4 sm:$0xff]  }
  0x74   : > { %881 = vmatpush1.bf16.msra.mxu0 %v2121_v2 }
  0x75   : > { %882 = vmatprep.subr.bf16.mxu0 %v2127_v3  ;;  %1011 = vmatpush1.bf16.msra.mxu1 %v1672_v10  ;;  %v2177_v10 = vld [vmem:[%s2352_s1 + $0x220] ss:$24 sps:$4 sm:$0xff]  }
  0x76   : > { %1012 = vmatprep.subr.bf16.mxu1 %v1678_v14  ;;  %v2183_v14 = vld [vmem:[%s2352_s1 + $0x254] ss:$24 sps:$4 sm:$0xff]  }
  0x78   : > { %883 = vmatpush1.bf16.msra.mxu0 %v2135_v4 }
  0x79   : > { %884 = vmatprep.subr.bf16.mxu0 %v2141_v5  ;;  %1013 = vmatpush1.bf16.msra.mxu1 %v1694_v17  ;;  %v2191_v17 = vld [vmem:[%s2352_s1 + $0x250] ss:$24 sps:$4 sm:$0xff]  }
  0x7a   : > { %1014 = vmatprep.subr.bf16.mxu1 %v1703_v20  ;;  %v2197_v20 = vld [vmem:[%s2352_s1 + $0x284] ss:$24 sps:$4 sm:$0xff]  }
  0x7c   : > { %885 = vmatpush1.bf16.msra.mxu0 %v2149_v6 }
  0x7d   : > { %886 = vmatprep.subr.bf16.mxu0 %v2155_v7  ;;  %1015 = vmatpush1.bf16.msra.mxu1 %v1721_v23  ;;  %v2205_v23 = vld [vmem:[%s2352_s1 + $0x280] ss:$24 sps:$4 sm:$0xff]  }
  0x7e   : > { %1016 = vmatprep.subr.bf16.mxu1 %v1726_v24  ;;  %v2211_v24 = vld [vmem:[%s2352_s1 + $0x2b4] ss:$24 sps:$4 sm:$0xff]  }
  0x80   : > { %887 = vmatpush1.bf16.msra.mxu0 %v2163_v8 }
  0x81   : > { %888 = vmatprep.subr.bf16.mxu0 %v2169_v9  ;;  %1017 = vmatpush1.bf16.msra.mxu1 %v1752_v29  ;;  %v2219_v29 = vld [vmem:[%s2352_s1 + $0x2b0] ss:$24 sps:$4 sm:$0xff]  }
  0x82   : > { %1018 = vmatprep.subr.bf16.mxu1 %v1760_v31  ;;  %v2225_v31 = vld [vmem:[%s2352_s1 + $0x2e4] ss:$24 sps:$4 sm:$0xff]  }
  0x84   : > { %889 = vmatpush1.bf16.msra.mxu0 %v2177_v10 }
  0x85   : > { %890 = vmatprep.subr.bf16.mxu0 %v2183_v14  ;;  %1019 = vmatpush1.bf16.msra.mxu1 %v1785_v36  ;;  %v2233_v36 = vld [vmem:[%s2352_s1 + $0x2e0] ss:$24 sps:$4 sm:$0xff]  }
  0x86   : > { %1020 = vmatprep.subr.bf16.mxu1 %v1790_v37 }
  0x88   : > { %891 = vmatpush1.bf16.msra.mxu0 %v2191_v17 }
  0x89   : > { %892 = vmatprep.subr.bf16.mxu0 %v2197_v20  ;;  %1021 = vmatpush1.bf16.msra.mxu1 %v1811_v41 }
  0x8a   : > { %1022 = vmatprep.subr.bf16.mxu1 %v1818_v42 }
  0x8c   : > { %893 = vmatpush1.bf16.msra.mxu0 %v2205_v23 }
  0x8d   : > { %894 = vmatprep.subr.bf16.mxu0 %v2211_v24  ;;  %1023 = vmatpush1.bf16.msra.mxu1 %v1837_v45  ;;  %v288_v45 = vld [vmem:[%s1614_s22] sm:$0x3f] }
  0x8e   : > { %1024 = vmatprep.subr.bf16.mxu1 %v1842_v46  ;;  %v289_v46 = vunpack.c.l.bf16 %v288_v45 }
  0x90   : > { %895 = vmatpush1.bf16.msra.mxu0 %v2219_v29 }
  0x91   : > { %896 = vmatprep.subr.bf16.mxu0 %v2225_v31  ;;  %1025 = vmatpush1.bf16.msra.mxu1 %v1860_v49 }
  0x92   : > { %1026 = vmatprep.subr.bf16.mxu1 %v1866_v50  ;;  %v926_v50 = vrot.slane %v289_v46, 4 }
  0x94   : > { %897 = vmatpush1.bf16.msra.mxu0 %v2233_v36 }
  0x95   : > { %1043 = vmatprep.subr.bf16.mxu0 %v1683_v15  ;;  %1027 = vmatpush1.bf16.msra.mxu1 %v1885_v53  ;;  %v2393_v15 = vld [vmem:[#allocation6_spill] sm:$0xff] }
  0x96   : > { %1028 = vmatprep.subr.bf16.mxu1 %v1890_v54 }
  0x97   : > { %899 = vmatmul.mubr.bf16.vlgmr.msra.gmra.mrb[4].mxu0 %v1979_v34 }
  0x98   : > { %1044 = vmatpush1.bf16.msra.mxu0 %v1688_v16  ;;  %v2394_v16 = vld [vmem:[#allocation7_spill] sm:$0xff] }
  0x99   : > { %1045 = vmatprep.subr.bf16.mxu0 %v1709_v21  ;;  %1029 = vmatpush1.bf16.msra.mxu1 %v1908_v57  ;;  %v2395_v21 = vld [vmem:[#allocation10_spill] sm:$0xff] }
  0x9a   : > { %1030 = vmatprep.subr.bf16.mxu1 %v1914_v58  ;;  %v275_v58 = vld [vmem:[%s2353_s2] sm:$0x3] }
  0x9c   : > { %1046 = vmatpush1.bf16.msra.mxu0 %v1714_v22  ;;  %v2396_v22 = vld [vmem:[#allocation11_spill] sm:$0xff] }
  0x9d   : > { %1047 = vmatprep.subr.bf16.mxu0 %v1731_v25  ;;  %1031 = vmatpush1.bf16.msra.mxu1 %v1933_v61  ;;  %v2397_v25 = vld [vmem:[#allocation14_spill] sm:$0xff] }
  0x9e   : > { %1032 = vmatprep.subr.bf16.mxu1 %v1938_v62 }
  0xa0   : > { %1048 = vmatpush1.bf16.msra.mxu0 %v1741_v27  ;;  %v2398_v27 = vld [vmem:[#allocation15_spill] sm:$0xff] }
  0xa1   : > { %1049 = vmatprep.subr.bf16.mxu0 %v1747_v28  ;;  %1033 = vmatpush1.bf16.msra.mxu1 %v1956_v11 }
  0xa2   : > { %1084 = vmatprep.subr.bf16.mxu1 %v1962_v12 }
  0xa4   : > { %1050 = vmatpush1.bf16.msra.mxu0 %v1771_v33 }
  0xa5   : > { %1051 = vmatprep.subr.bf16.mxu0 %v1779_v35 }
  0xa8   : > { %1052 = vmatpush1.bf16.msra.mxu0 %v1799_v39 }
  0xa9   : > { %1053 = vmatprep.subr.bf16.mxu0 %v1806_v40 }
  0xac   : > { %1054 = vmatpush1.bf16.msra.mxu0 %v1825_v43 }
  0xad   : > { %1055 = vmatprep.subr.bf16.mxu0 %v1831_v44 }
  0xb0   : > { %1056 = vmatpush1.bf16.msra.mxu0 %v1849_v47  ;;  %v2399_v47 = vld [vmem:[#allocation4_spill] sm:$0xff] }
  0xb1   : > { %1057 = vmatprep.subr.bf16.mxu0 %v1855_v48 }
  0xb4   : > { %1058 = vmatpush1.bf16.msra.mxu0 %v1873_v51 }
  0xb5   : > { %1059 = vmatprep.subr.bf16.mxu0 %v1879_v52 }
  0xb8   : > { %1060 = vmatpush1.bf16.msra.mxu0 %v1897_v55 }
  0xb9   : > { %1061 = vmatprep.subr.bf16.mxu0 %v1903_v56  ;;  %v2400_v56 = vld [vmem:[#allocation3_spill] sm:$0xff] }
  0xba   : > { %v280_v57 = vsub.s32 0, %v2400_v56 }
  0xbc   : > { %1062 = vmatpush1.bf16.msra.mxu0 %v1921_v59  ;;  %v284_v59 = vsub.s32 1, %v2400_v56 }
  0xbd   : > { %1063 = vmatprep.subr.bf16.mxu0 %v1927_v60  ;;  %v2290_v60 = vrot.slane %v275_v58, %v280_v57  ;;  %v2407_v57 = vld [vmem:[#allocation17_spill] sm:$0xff] }
  0xbe   : > { %v2292_v61 = vrot.slane %v275_v58, %v284_v59  ;;  %v2408_v58 = vld [vmem:[#allocation18_spill] sm:$0xff]  ;;  %v2409_v59 = vld [vmem:[#allocation19_spill] sm:$0xff] }
  0xc0   : > { %1064 = vmatpush1.bf16.msra.mxu0 %v1945_v63 }
  0xc1   : > { %1065 = vmatprep.subr.bf16.mxu0 %v1951_v0 }
  0xc4   : > { %1066 = vmatpush1.bf16.msra.mxu0 %v2393_v15 }
  0xc5   : > { %1067 = vmatprep.subr.bf16.mxu0 %v2394_v16  ;;  %v290_v16 = vunpack.c.h.bf16 %v288_v45 }
  0xc8   : > { %1068 = vmatpush1.bf16.msra.mxu0 %v2395_v21 }
  0xc9   : > { %1069 = vmatprep.subr.bf16.mxu0 %v2396_v22 }
  0xcc   : > { %1070 = vmatpush1.bf16.msra.mxu0 %v2397_v25 }
  0xcd   : > { %1071 = vmatprep.subr.bf16.mxu0 %v2398_v27 }
  0xd0   : > { %1072 = vmatpush1.bf16.msra.mxu0 %v2047_v26 }
  0xd1   : > { %1073 = vmatprep.subr.bf16.mxu0 %v2053_v13 }
  0xd4   : > { %1074 = vmatpush1.bf16.msra.mxu0 %v2071_v38 }
 0x12a   : > { %v818_v28 = vpop.f32.mrb[0].mxu0 }
 0x12b   : > { %v820_v33 = vpop.f32.mrb[1].mxu0 }
 0x12c   : > { %v909_v35 = vcombine.low %v818_v28, %v820_v33  ;;  %v822_v37 = vpop.f32.mrb[2].mxu0 }
 0x12d   : > { %v823_v39 = vpop.f32.mrb[3].mxu0 }
 0x12e   : > { %v916_v48 = vrot.slane %v909_v35, %v2399_v47  ;;  %v1577_v35 = vmov 1966171168  }
 0x12f   : > { %v983_v37 = vunpack.c.l.s4 %v1577_v35 }
 0x130   : > { %v918_v49 = vadd.f32 %v916_v48, %v289_v46 }
 0x132   : > { %v1379_v26 = vmul.f32 -1.442695, %v918_v49 }
 0x134   : > { %1547 = vpow2.f32 %v1379_v26 }
 0x137   : > { %v859_v40 = vpop.f32.mrb[0].mxu1 }
 0x138   : > { %v861_v41 = vpop.f32.mrb[1].mxu1 }
 0x139   : > { %v930_v42 = vcombine.low %v859_v40, %v861_v41  ;;  %v863_v43 = vpop.f32.mrb[2].mxu1  ;;  %v2401_v41 = vld [vmem:[#allocation5_spill] sm:$0xff] }
 0x13a   : > { %v864_v44 = vpop.f32.mrb[3].mxu1 }
 0x13b   : > { %v937_v51 = vrot.slane %v930_v42, %v2399_v47  ;;  %v984_v44 = vunpack.c.0.s8 %v983_v37 }
 0x13d   : > { %v939_v52 = vadd.f32 %v937_v51, %v926_v50  ;;  %v2303_v48 = vsub.s32 %v984_v44, %v2400_v56  ;;  %v2406_v56 = vld [vmem:[#allocation16_spill] sm:$0xff] }
 0x13e   : > { %v1548_v54 = vpop.eup %1547 }
 0x13f   : > { %v1380_v53 = vmul.f32 -1.442695, %v939_v52  ;;  %v922_v55 = vadd.f32 1.0, %v1548_v54  ;;  %v2402_v52 = vld [vmem:[#allocation8_spill] sm:$0xff] }
 0x140   : > { %v2404_v54 = vld [vmem:[#allocation12_spill] sm:$0xff] }
 0x141   : > { %1549 = vpow2.f32 %v1380_v53  ;;  %v2403_v53 = vld [vmem:[#allocation9_spill] sm:$0xff] }
 0x142   : > { %1551 = vrcp.f32 %v922_v55  ;;  %v2405_v55 = vld [vmem:[#allocation13_spill] sm:$0xff] }
 0x14b   : > { %v1550_v62 = vpop.eup %1549 }
 0x14c   : > { %v943_v12 = vadd.f32 1.0, %v1550_v62  ;;  %v1552_v22 = vpop.eup %1551  ;;  %v2410_v62 = vld [vmem:[#allocation20_spill] sm:$0xff] }
 0x14e   : > { %1553 = vrcp.f32 %v943_v12 }
 0x158   : > { %v1554_v28 = vpop.eup %1553 }
 0x159   : > { %v962_v33 = vsub.f32 1.0, %v1554_v28  ;;  %v964_v42 = vmul.f32 %v1554_v28, %v2401_v41 }
 0x16a   : > { %v900_v63 = vpop.f32.mrb[4].mxu0 }
 0x16b   : > { %v946_v0 = vadd.f32 %v900_v63, %v2290_v60  ;;  %v902_v11 = vpop.f32.mrb[5].mxu0 }
 0x16c   : > { %v947_v13 = vadd.f32 %v902_v11, %v2292_v61  ;;  %v904_v34 = vpop.f32.mrb[6].mxu0 }
 0x16d   : > { %v905_v38 = vpop.f32.mrb[7].mxu0 }
 0x16e   : > { %v950_v15 = vcombine.low %v946_v0, %v947_v13 }
 0x170   : > { %v957_v21 = vrot.slane %v950_v15, %v2399_v47 }
 0x172   : > { %v959_v25 = vmul.f32 %v1552_v22, %v957_v21 }
 0x174   : > { %v960_v27 = vadd.f32 %v959_v25, %v290_v16 }
 0x176   : > { %1555 = vtanh.f32 %v960_v27 }
 0x180   : > { %v1556_v39 = vpop.eup %1555 }
 0x181   : > { %v963_v40 = vmul.f32 %v1556_v39, %v962_v33 }
 0x183   : > { %v2298_v43 = vadd.f32 %v964_v42, %v963_v40 }
 0x185   : > { %v973_v45 = vrot.slane %v2298_v43, %v2399_v47 }
 0x187   : > { %v974_v46 = vcombine.high %v973_v45, %v973_v45  ;;  %v977_v50 = vpack.c.bf16 %v973_v45, %v973_v45 }
 0x189   : > { %v978_v49 = vpack.c.bf16 %v974_v46, %v974_v46  ;;  %v1381_v26 = vpack.c.bf16 %v974_v46, %v973_v45 }
 0x18b   : > { %v988_v51 = vrot.slane %v1381_v26, %v2303_v48  ;;  %1034 = vmatprep.mubr.bf16.mxu1 %v978_v49  ;;  %1075 = vmatprep.mubr.bf16.mxu0 %v978_v49 }
 0x18c   : > { %1035 = vmatmul.mubr.bf16.vlgmr.msra.gmra.mrb[4].mxu1 %v977_v50  ;;  %1076 = vmatmul.mubr.bf16.vlgmr.msra.gmra.mrb[8].mxu0 %v977_v50 }
 0x18d   : > { %1382 = vst.sshfl [vmem:[%s1609_s19] sm:$0x5 pattern:$0x73625140] %v988_v51  ;;  %1085 = vmatpush1.bf16.msra.mxu1 %v2402_v52  ;;  %1116 = vmatprep.mubr.bf16.mxu1 %v978_v49 }
 0x18e   : > { %1086 = vmatprep.subr.bf16.mxu1 %v2403_v53 }
 0x191   : > { %1087 = vmatpush1.bf16.msra.mxu1 %v2404_v54 }
 0x192   : > { %1088 = vmatprep.subr.bf16.mxu1 %v2405_v55 }
 0x195   : > { %1089 = vmatpush1.bf16.msra.mxu1 %v2406_v56 }
 0x196   : > { %1090 = vmatprep.subr.bf16.mxu1 %v2407_v57 }
 0x199   : > { %1091 = vmatpush1.bf16.msra.mxu1 %v2408_v58 }
 0x19a   : > { %1092 = vmatprep.subr.bf16.mxu1 %v2409_v59 }
 0x19d   : > { %1093 = vmatpush1.bf16.msra.mxu1 %v2078_v32 }
 0x19e   : > { %1094 = vmatprep.subr.bf16.mxu1 %v2410_v62 }
 0x1a1   : > { %1095 = vmatpush1.bf16.msra.mxu1 %v2092_v19 }
 0x1a2   : > { %1096 = vmatprep.subr.bf16.mxu1 %v2099_v30 }
 0x1a5   : > { %1097 = vmatpush1.bf16.msra.mxu1 %v2107_v1 }
 0x1a6   : > { %1098 = vmatprep.subr.bf16.mxu1 %v2113_v18 }
 0x1a9   : > { %1099 = vmatpush1.bf16.msra.mxu1 %v2121_v2 }
 0x1aa   : > { %1100 = vmatprep.subr.bf16.mxu1 %v2127_v3 }
 0x1ad   : > { %1101 = vmatpush1.bf16.msra.mxu1 %v2135_v4 }
 0x1ae   : > { %1102 = vmatprep.subr.bf16.mxu1 %v2141_v5 }
 0x1b1   : > { %1103 = vmatpush1.bf16.msra.mxu1 %v2149_v6 }
 0x1b2   : > { %1104 = vmatprep.subr.bf16.mxu1 %v2155_v7  ;;  %v1383_v7 = vld [vmem:[%s1614_s22 + $0x6] sm:$0x3f] }
 0x1b3   : > { %v1001_v16 = vunpack.c.h.bf16 %v1383_v7 }
 0x1b5   : > { %1105 = vmatpush1.bf16.msra.mxu1 %v2163_v8 }
 0x1b6   : > { %1106 = vmatprep.subr.bf16.mxu1 %v2169_v9  ;;  %v1000_v9 = vunpack.c.l.bf16 %v1383_v7 }
 0x1b9   : > { %1107 = vmatpush1.bf16.msra.mxu1 %v2177_v10 }
 0x1ba   : > { %1108 = vmatprep.subr.bf16.mxu1 %v2183_v14 }
 0x1bd   : > { %1109 = vmatpush1.bf16.msra.mxu1 %v2191_v17  ;;  %v1144_v17 = vrot.slane %v1000_v9, 4 }
 0x1be   : > { %1110 = vmatprep.subr.bf16.mxu1 %v2197_v20 }
 0x1c1   : > { %1111 = vmatpush1.bf16.msra.mxu1 %v2205_v23 }
 0x1c2   : > { %1112 = vmatprep.subr.bf16.mxu1 %v2211_v24 }
 0x1c5   : > { %1113 = vmatpush1.bf16.msra.mxu1 %v2219_v29 }
 0x1c6   : > { %1114 = vmatprep.subr.bf16.mxu1 %v2225_v31 }
 0x1c9   : > { %1115 = vmatpush1.bf16.msra.mxu1 %v2233_v36 }
 0x1cc   : > { %1117 = vmatmul.mubr.bf16.vlgmr.msra.gmra.mrb[8].mxu1 %v977_v50 }
 0x25f   : > { %v1036_v18 = vpop.f32.mrb[4].mxu1  ;;  %v1077_v30 = vpop.f32.mrb[8].mxu0 }
 0x260   : > { %v1038_v19 = vpop.f32.mrb[5].mxu1  ;;  %v1079_v32 = vpop.f32.mrb[9].mxu0 }
 0x261   : > { %v1127_v1 = vcombine.low %v1036_v18, %v1038_v19  ;;  %v1148_v2 = vcombine.low %v1077_v30, %v1079_v32  ;;  %v1040_v3 = vpop.f32.mrb[6].mxu1  ;;  %v1081_v4 = vpop.f32.mrb[10].mxu0 }
 0x262   : > { %v1041_v5 = vpop.f32.mrb[7].mxu1  ;;  %v1082_v6 = vpop.f32.mrb[11].mxu0 }
 0x263   : > { %v1134_v8 = vrot.slane %v1127_v1, %v2399_v47  ;;  %v1155_v20 = vrot.slane %v1148_v2, %v2399_v47 }
 0x265   : > { %v1136_v10 = vadd.f32 %v1134_v8, %v1000_v9  ;;  %v1157_v23 = vadd.f32 %v1155_v20, %v1144_v17 }
 0x267   : > { %v1384_v14 = vmul.f32 -1.442695, %v1136_v10  ;;  %v1385_v24 = vmul.f32 -1.442695, %v1157_v23 }
 0x269   : > { %1557 = vpow2.f32 %v1384_v14 }
 0x26a   : > { %1559 = vpow2.f32 %v1385_v24 }
 0x273   : > { %v1558_v29 = vpop.eup %1557 }
 0x274   : > { %v1140_v31 = vadd.f32 1.0, %v1558_v29  ;;  %v1560_v63 = vpop.eup %1559 }
 0x275   : > { %v1161_v38 = vadd.f32 1.0, %v1560_v63 }
 0x276   : > { %1561 = vrcp.f32 %v1140_v31 }
 0x277   : > { %1563 = vrcp.f32 %v1161_v38 }
 0x280   : > { %v1562_v22 = vpop.eup %1561 }
 0x281   : > { %v1564_v28 = vpop.eup %1563 }
 0x282   : > { %v1180_v33 = vsub.f32 1.0, %v1564_v28 }
 0x29f   : > { %v1118_v36 = vpop.f32.mrb[8].mxu1 }
 0x2a0   : > { %v1164_v0 = vadd.f32 %v1118_v36, %v2290_v60  ;;  %v1120_v11 = vpop.f32.mrb[9].mxu1  ;;  %v1182_v60 = vmul.f32 %v1564_v28, %v2298_v43 }
 0x2a1   : > { %v1165_v12 = vadd.f32 %v1120_v11, %v2292_v61  ;;  %v1122_v13 = vpop.f32.mrb[10].mxu1 }
 0x2a2   : > { %v1123_v34 = vpop.f32.mrb[11].mxu1 }
 0x2a3   : > { %v1168_v15 = vcombine.low %v1164_v0, %v1165_v12 }
 0x2a5   : > { %v1175_v21 = vrot.slane %v1168_v15, %v2399_v47 }
 0x2a7   : > { %v1177_v25 = vmul.f32 %v1562_v22, %v1175_v21 }
 0x2a9   : > { %v1178_v27 = vadd.f32 %v1177_v25, %v1001_v16 }
 0x2ab   : > { %1565 = vtanh.f32 %v1178_v27 }
 0x2b5   : > { %v1566_v35 = vpop.eup %1565 }
 0x2b6   : > { %v1181_v37 = vmul.f32 %v1566_v35, %v1180_v33 }
 0x2b8   : > { %v1183_v61 = vadd.f32 %v1182_v60, %v1181_v37 }
 0x2ba   : > { %v1191_v39 = vrot.slane %v1183_v61, %v2399_v47  ;;  %1217 = vst [vmem:[#allocation2] sm:$0xf] %v1183_v61 }
 0x2bc   : > { %v1192_v40 = vcombine.high %v1191_v39, %v1191_v39 }
 0x2be   : > { %v1386_v41 = vpack.c.bf16 %v1192_v40, %v1191_v39 }
 0x2c0   : > { %v1206_v42 = vrot.slane %v1386_v41, %v2303_v48 }
 0x2c2   : > { %1390 = vst.sshfl [vmem:[%s1609_s19 + $0x2] sm:$0x5 pattern:$0x73625140] %v1206_v42 }
 0x2c3 PF: > { %s13_s12 = sadd.s32 1, %s1573_s12  }
 0x2c4   : > { %p10_p5 = scmp.ge.s32.totalorder %s13_s12, 6  }
 0x2c6   :  { %12 = sbr.rel (!%p10_p5) target bundleno = 1 (0x1), region = 68 }

// kernel: bigru_forward.3
= control target key start
LH: loop header
LB: loop body
LE: loop exit
PB: predicated region body
PF: predicated region fallthrough
CT: control target
= control target key end

     0   :  { %12 = vsyncpa [#allocation4], 0  ;;  %s2737_s0 = inlined_call_operand.vmem [shape: bf16[8,2,768], index: 0, kind: input, shape index: {}]   ;;  %s2738_s1 = inlined_call_operand.vmem [shape: bf16[256,768], index: 1, kind: input, shape index: {}]   ;;  %s2739_s2 = inlined_call_operand.vmem [shape: f32[1,256], index: 2, kind: input, shape index: {}]   ;;  %s2740_s3 = inlined_call_operand.vmem [shape: f32[128,128], index: 3, kind: input, shape index: {}]   ;;  %s2741_s4 = inlined_call_operand.vmem [shape: f32[1,128], index: 4, kind: input, shape index: {}]   ;;  %s2742_s5 = inlined_call_operand.hbm [shape: f32[2,128], index: 5, kind: output, shape index: {0}]   ;;  %s2743_s6 = inlined_call_operand.hbm [shape: f32[2,128], index: 6, kind: output, shape index: {1}]  }
   0x1   :  { %13 = vsyncpa [#allocation6], 0  ;;  %s1896_s21 = smov 0  }
   0x2 LB: > { %s1902_s22 = sadd.s32 4294967295, %s1852_s21   ;;  %p1406_p0 = scmp.ge.s32.totalorder %s1852_s21, 1  ;;  %s1852_s21 = sphi %s1896_s21, %s19_s21  }
   0x3   : > { %p208_p1 = scmp.lt.s32.totalorder %s1852_s21, 5 }
   0x5   : > { %p209_p2 = pnand %p1406_p0, %p208_p1 }
   0x7   : > { %212 = sbr.rel (%p209_p2) target bundleno = 975 (0x3cf), region = 40 }
   0xe   : > { %s1407_s23 = sshll.u32 %s1902_s22, 1  ;;  %p1408_p4 = scmp.ne.s32.totalorder %s1902_s22, 0 }
   0xf   : > { %p234_p3 = scmp.lt.s32.totalorder %s1407_s23, 7  ;;  %v1854_v0 = vmov (!%p1408_p4), 0.0  }
  0x10   : > { %242 = sbr.rel (%p1408_p4) target bundleno = 23 (0x17), region = 44  ;;  %243 = vst [vmem:[#allocation2] sm:$0xf] (!%p1408_p4), %v1854_v0 }
  0x11   : > { %s2801_s23 = smov (!%p234_p3, %s1407_s23), 7 }
  0x12   : > { %s1594_s24 = smul.u32 6, %s2801_s23 }
  0x14   : > { %s1910_s27 = scalar_lea.vmem %s2737_s0, %s1594_s24 }
  0x17 PF: > { %v1916_v1 = vld [vmem:[%s2738_s1 + $0x4] ss:$24 sps:$4 sm:$0xff]   ;;  %v1921_v2 = vld [vmem:[%s2738_s1] ss:$24 sps:$4 sm:$0xff]   ;;  %v1927_v3 = vld [vmem:[%s2738_s1 + $0x34] ss:$24 sps:$4 sm:$0xff]   ;;  %v343_v11 = vlaneseq }
  0x18   : > { %849 = vmatprep.subr.bf16.mxu0 %v1916_v1  ;;  %v1933_v4 = vld [vmem:[%s2738_s1 + $0x30] ss:$24 sps:$4 sm:$0xff]   ;;  %v1939_v5 = vld [vmem:[%s2738_s1 + $0x64] ss:$24 sps:$4 sm:$0xff]   ;;  %v1945_v6 = vld [vmem:[%s2738_s1 + $0x60] ss:$24 sps:$4 sm:$0xff]  }
  0x19   : > { %850 = vmatpush1.bf16.msra.mxu0 %v1921_v2  ;;  %v1951_v7 = vld [vmem:[%s2738_s1 + $0x94] ss:$24 sps:$4 sm:$0xff]   ;;  %v1957_v8 = vld [vmem:[%s2738_s1 + $0x90] ss:$24 sps:$4 sm:$0xff]   ;;  %v1963_v9 = vld [vmem:[%s2738_s1 + $0xc4] ss:$24 sps:$4 sm:$0xff]  }
  0x1a   : > { %851 = vmatprep.subr.bf16.mxu0 %v1927_v3  ;;  %v1969_v10 = vld [vmem:[%s2738_s1 + $0xc0] ss:$24 sps:$4 sm:$0xff]   ;;  %v1855_v12 = vmov 1983009808   ;;  %v1975_v14 = vld [vmem:[%s2738_s1 + $0xf4] ss:$24 sps:$4 sm:$0xff]  }
  0x1b   : > { %v358_v13 = vunpack.c.l.s4 %v1855_v12  ;;  %v1980_v15 = vld [vmem:[%s2738_s1 + $0xc] ss:$24 sps:$4 sm:$0xff]   ;;  %v1985_v16 = vld [vmem:[%s2738_s1 + $0x8] ss:$24 sps:$4 sm:$0xff]   ;;  %v1994_v18 = vshrl.u32 %v343_v11, 7  ;;  %p1510_p5 = scmp.ne.s32.totalorder %s1902_s22, 3 }
  0x1c   : > { %v1991_v17 = vld [vmem:[%s2738_s1 + $0xf0] ss:$24 sps:$4 sm:$0xff]   ;;  %890 = vmatprep.subr.bf16.mxu1 %v1980_v15  ;;  %v2000_v20 = vld [vmem:[%s2738_s1 + $0x124] ss:$24 sps:$4 sm:$0xff]   ;;  %v2018_v23 = vld [vmem:[%s2738_s1 + $0x120] ss:$24 sps:$4 sm:$0xff]  }
  0x1d   : > { %852 = vmatpush1.bf16.msra.mxu0 %v1933_v4  ;;  %2764 = vst [vmem:[#allocation9_spill] sm:$0xff] %v1994_v18  ;;  %v359_v19 = vunpack.c.0.s8 %v358_v13  ;;  %891 = vmatpush1.bf16.msra.mxu1 %v1985_v16  ;;  %v2006_v21 = vld [vmem:[%s2738_s1 + $0x3c] ss:$24 sps:$4 sm:$0xff]   ;;  %v2011_v22 = vld [vmem:[%s2738_s1 + $0x38] ss:$24 sps:$4 sm:$0xff]   ;;  %vm1857_vm0 = vmmov (!%p1510_p5), 0  }
  0x1e   : > { %853 = vmatprep.subr.bf16.mxu0 %v1939_v5  ;;  %892 = vmatprep.subr.bf16.mxu1 %v2006_v21  ;;  %v2023_v24 = vld [vmem:[%s2738_s1 + $0x154] ss:$24 sps:$4 sm:$0xff]   ;;  %v2038_v27 = vld [vmem:[%s2738_s1 + $0x68] ss:$24 sps:$4 sm:$0xff]   ;;  %v2057_v31 = vld [vmem:[%s2738_s1 + $0x184] ss:$24 sps:$4 sm:$0xff]  }
  0x1f   : > { %v2028_v25 = vld [vmem:[%s2738_s1 + $0x6c] ss:$24 sps:$4 sm:$0xff]   ;;  %v2031_v26 = vsub.s32 %v359_v19, %v1994_v18  ;;  %v2044_v28 = vld [vmem:[%s2738_s1 + $0x9c] ss:$24 sps:$4 sm:$0xff]   ;;  %v2049_v29 = vld [vmem:[%s2738_s1 + $0x150] ss:$24 sps:$4 sm:$0xff]  }
  0x20   : > { %v2051_v30 = vld [vmem:[#allocation2] sm:$0xf]  ;;  %v2068_v33 = vld [vmem:[%s2738_s1 + $0x98] ss:$24 sps:$4 sm:$0xff]   ;;  %v2076_v35 = vld [vmem:[%s2738_s1 + $0xcc] ss:$24 sps:$4 sm:$0xff]  }
  0x21   : > { %854 = vmatpush1.bf16.msra.mxu0 %v1945_v6  ;;  %2765 = vst [vmem:[#allocation10_spill] sm:$0xff] %v2031_v26  ;;  %893 = vmatpush1.bf16.msra.mxu1 %v2011_v22  ;;  %2766 = vst [vmem:[#allocation11_spill] sm:$0xff] %v2051_v30  ;;  %v2061_v32 = vrot.slane %v2051_v30, %v2031_v26  ;;  %v2082_v36 = vld [vmem:[%s2738_s1 + $0x180] ss:$24 sps:$4 sm:$0xff]   ;;  %v2087_v37 = vld [vmem:[%s2738_s1 + $0x1b4] ss:$24 sps:$4 sm:$0xff]  }
  0x22   : > { %855 = vmatprep.subr.bf16.mxu0 %v1951_v7  ;;  %894 = vmatprep.subr.bf16.mxu1 %v2028_v25  ;;  %v2096_v39 = vld [vmem:[%s2738_s1 + $0xc8] ss:$24 sps:$4 sm:$0xff]   ;;  %v2103_v40 = vld [vmem:[%s2738_s1 + $0xfc] ss:$24 sps:$4 sm:$0xff]   ;;  %v2122_v43 = vld [vmem:[%s2738_s1 + $0xf8] ss:$24 sps:$4 sm:$0xff]  }
  0x23   : > { %v364_v34 = vcombine.high %v2061_v32, %v2061_v32  ;;  %v2108_v41 = vld [vmem:[%s2738_s1 + $0x1b0] ss:$24 sps:$4 sm:$0xff]   ;;  %v2115_v42 = vld [vmem:[%s2738_s1 + $0x1e4] ss:$24 sps:$4 sm:$0xff]   ;;  %v2134_v45 = vld [vmem:[%s2738_s1 + $0x1e0] ss:$24 sps:$4 sm:$0xff]  }
  0x24   : > { %v2128_v44 = vld [vmem:[%s2738_s1 + $0x12c] ss:$24 sps:$4 sm:$0xff]   ;;  %v2146_v47 = vld [vmem:[%s2738_s1 + $0x128] ss:$24 sps:$4 sm:$0xff]   ;;  %v2152_v48 = vld [vmem:[%s2738_s1 + $0x15c] ss:$24 sps:$4 sm:$0xff]  }
  0x25   : > { %856 = vmatpush1.bf16.msra.mxu0 %v1957_v8  ;;  %895 = vmatpush1.bf16.msra.mxu1 %v2038_v27  ;;  %v2089_v38 = vpack.c.bf16 %v364_v34, %v364_v34  ;;  %v2139_v46 = vld [vmem:[%s2738_s1 + $0x214] ss:$24 sps:$4 sm:$0xff]   ;;  %v2157_v49 = vld [vmem:[%s2738_s1 + $0x210] ss:$24 sps:$4 sm:$0xff]   ;;  %v2163_v50 = vld [vmem:[%s2738_s1 + $0x244] ss:$24 sps:$4 sm:$0xff]   ;;  %v2276_v34 = vpack.c.bf16 %v2061_v32, %v2061_v32 }
  0x26   : > { %857 = vmatprep.subr.bf16.mxu0 %v1963_v9  ;;  %896 = vmatprep.subr.bf16.mxu1 %v2044_v28  ;;  %v2170_v51 = vld [vmem:[%s2738_s1 + $0x158] ss:$24 sps:$4 sm:$0xff]   ;;  %v2176_v52 = vld [vmem:[%s2738_s1 + $0x18c] ss:$24 sps:$4 sm:$0xff]   ;;  %v2194_v55 = vld [vmem:[%s2738_s1 + $0x188] ss:$24 sps:$4 sm:$0xff]  }
  0x27   : > { %881 = vmatprep.mubr.bf16.mxu0 %v2089_v38  ;;  %922 = vmatprep.mubr.bf16.mxu1 %v2089_v38  ;;  %v2182_v53 = vld [vmem:[%s2738_s1 + $0x240] ss:$24 sps:$4 sm:$0xff]   ;;  %v2187_v54 = vld [vmem:[%s2738_s1 + $0x274] ss:$24 sps:$4 sm:$0xff]   ;;  %v2205_v57 = vld [vmem:[%s2738_s1 + $0x270] ss:$24 sps:$4 sm:$0xff]  }
  0x28   : > { %v2200_v56 = vld [vmem:[%s2738_s1 + $0x1bc] ss:$24 sps:$4 sm:$0xff]   ;;  %v2218_v59 = vld [vmem:[%s2738_s1 + $0x1b8] ss:$24 sps:$4 sm:$0xff]   ;;  %v2224_v60 = vld [vmem:[%s2738_s1 + $0x1ec] ss:$24 sps:$4 sm:$0xff]  }
  0x29   : > { %858 = vmatpush1.bf16.msra.mxu0 %v1969_v10  ;;  %897 = vmatpush1.bf16.msra.mxu1 %v2068_v33  ;;  %v2211_v58 = vld [vmem:[%s2738_s1 + $0x2a4] ss:$24 sps:$4 sm:$0xff]   ;;  %v2230_v61 = vld [vmem:[%s2738_s1 + $0x2a0] ss:$24 sps:$4 sm:$0xff]   ;;  %v2235_v62 = vld [vmem:[%s2738_s1 + $0x2d4] ss:$24 sps:$4 sm:$0xff]  }
  0x2a   : > { %859 = vmatprep.subr.bf16.mxu0 %v1975_v14  ;;  %898 = vmatprep.subr.bf16.mxu1 %v2076_v35  ;;  %v2242_v63 = vld [vmem:[%s2738_s1 + $0x1e8] ss:$24 sps:$4 sm:$0xff]   ;;  %v2248_v0 = vld [vmem:[%s2738_s1 + $0x21c] ss:$24 sps:$4 sm:$0xff]   ;;  %v2266_v13 = vld [vmem:[%s2738_s1 + $0x218] ss:$24 sps:$4 sm:$0xff]  }
  0x2b   : > { %v2253_v11 = vld [vmem:[%s2738_s1 + $0x2d0] ss:$24 sps:$4 sm:$0xff]   ;;  %v2259_v12 = vld [vmem:[%s2738_s1 + $0x14] ss:$24 sps:$4 sm:$0xff]   ;;  %2767 = vst [vmem:[#allocation12_spill] sm:$0xff] %v2266_v13 }
  0x2c   : > { %v2272_v19 = vld [vmem:[%s2738_s1 + $0x24c] ss:$24 sps:$4 sm:$0xff]   ;;  %v2282_v30 = vld [vmem:[%s2738_s1 + $0x10] ss:$24 sps:$4 sm:$0xff]   ;;  %v2300_v26 = vld [vmem:[%s2738_s1 + $0x27c] ss:$24 sps:$4 sm:$0xff]  }
  0x2d   : > { %860 = vmatpush1.bf16.msra.mxu0 %v1991_v17  ;;  %899 = vmatpush1.bf16.msra.mxu1 %v2096_v39  ;;  %2768 = vst [vmem:[#allocation13_spill] sm:$0xff] %v2272_v19  ;;  %2769 = vst [vmem:[#allocation14_spill] sm:$0xff] %v2282_v30  ;;  %v2288_v18 = vld [vmem:[%s2738_s1 + $0x44] ss:$24 sps:$4 sm:$0xff]   ;;  %v2294_v32 = vld [vmem:[%s2738_s1 + $0x248] ss:$24 sps:$4 sm:$0xff]  }
  0x2e   : > { %861 = vmatprep.subr.bf16.mxu0 %v2000_v20  ;;  %900 = vmatprep.subr.bf16.mxu1 %v2103_v40  ;;  %2770 = vst [vmem:[#allocation15_spill] sm:$0xff] %v2288_v18  ;;  %2771 = vst [vmem:[#allocation16_spill] sm:$0xff] %v2294_v32 }
  0x2f   : > { %2772 = vst [vmem:[#allocation17_spill] sm:$0xff] %v2300_v26 }
  0x31   : > { %862 = vmatpush1.bf16.msra.mxu0 %v2018_v23  ;;  %901 = vmatpush1.bf16.msra.mxu1 %v2122_v43 }
  0x32   : > { %863 = vmatprep.subr.bf16.mxu0 %v2023_v24  ;;  %902 = vmatprep.subr.bf16.mxu1 %v2128_v44 }
  0x35   : > { %864 = vmatpush1.bf16.msra.mxu0 %v2049_v29  ;;  %903 = vmatpush1.bf16.msra.mxu1 %v2146_v47 }
  0x36   : > { %865 = vmatprep.subr.bf16.mxu0 %v2057_v31  ;;  %904 = vmatprep.subr.bf16.mxu1 %v2152_v48 }
  0x39   : > { %866 = vmatpush1.bf16.msra.mxu0 %v2082_v36  ;;  %905 = vmatpush1.bf16.msra.mxu1 %v2170_v51 }
  0x3a   : > { %867 = vmatprep.subr.bf16.mxu0 %v2087_v37  ;;  %906 = vmatprep.subr.bf16.mxu1 %v2176_v52 }
  0x3d   : > { %868 = vmatpush1.bf16.msra.mxu0 %v2108_v41  ;;  %907 = vmatpush1.bf16.msra.mxu1 %v2194_v55 }
  0x3e   : > { %869 = vmatprep.subr.bf16.mxu0 %v2115_v42  ;;  %908 = vmatprep.subr.bf16.mxu1 %v2200_v56 }
  0x41   : > { %870 = vmatpush1.bf16.msra.mxu0 %v2134_v45  ;;  %909 = vmatpush1.bf16.msra.mxu1 %v2218_v59 }
  0x42   : > { %871 = vmatprep.subr.bf16.mxu0 %v2139_v46  ;;  %910 = vmatprep.subr.bf16.mxu1 %v2224_v60 }
  0x45   : > { %872 = vmatpush1.bf16.msra.mxu0 %v2157_v49  ;;  %911 = vmatpush1.bf16.msra.mxu1 %v2242_v63 }
  0x46   : > { %873 = vmatprep.subr.bf16.mxu0 %v2163_v50  ;;  %912 = vmatprep.subr.bf16.mxu1 %v2248_v0 }
  0x49   : > { %874 = vmatpush1.bf16.msra.mxu0 %v2182_v53  ;;  %913 = vmatpush1.bf16.msra.mxu1 %v2266_v13  ;;  %v2307_v13 = vld [vmem:[%s2738_s1 + $0x40] ss:$24 sps:$4 sm:$0xff]  }
  0x4a   : > { %875 = vmatprep.subr.bf16.mxu0 %v2187_v54  ;;  %914 = vmatprep.subr.bf16.mxu1 %v2272_v19  ;;  %2773 = vst [vmem:[#allocation18_spill] sm:$0xff] %v2307_v13  ;;  %v2314_v19 = vld [vmem:[%s2738_s1 + $0x74] ss:$24 sps:$4 sm:$0xff]  }
  0x4b   : > { %2774 = vst [vmem:[#allocation19_spill] sm:$0xff] %v2314_v19 }
  0x4d   : > { %876 = vmatpush1.bf16.msra.mxu0 %v2205_v57  ;;  %915 = vmatpush1.bf16.msra.mxu1 %v2294_v32  ;;  %v2338_v32 = vld [vmem:[%s2738_s1 + $0xa4] ss:$24 sps:$4 sm:$0xff]  }
  0x4e   : > { %877 = vmatprep.subr.bf16.mxu0 %v2211_v58  ;;  %916 = vmatprep.subr.bf16.mxu1 %v2300_v26  ;;  %2778 = vst [vmem:[#allocation23_spill] sm:$0xff] %v2338_v32  ;;  %v2344_v26 = vld [vmem:[%s2738_s1 + $0x2a8] ss:$24 sps:$4 sm:$0xff]  }
  0x51   : > { %878 = vmatpush1.bf16.msra.mxu0 %v2230_v61 }
  0x52   : > { %879 = vmatprep.subr.bf16.mxu0 %v2235_v62 }
  0x55   : > { %880 = vmatpush1.bf16.msra.mxu0 %v2253_v11 }
  0x56   : > { %931 = vmatprep.subr.bf16.mxu0 %v2259_v12 }
  0x58   : > { %882 = vmatmul.mubr.bf16.vlgmr.msra.gmra.mrb[0].mxu0 %v2276_v34 }
  0x59   : > { %932 = vmatpush1.bf16.msra.mxu0 %v2282_v30  ;;  %963 = vmatprep.mubr.bf16.mxu0 %v2089_v38  ;;  %v2320_v30 = vld [vmem:[%s2738_s1 + $0x278] ss:$24 sps:$4 sm:$0xff]   ;;  %v2326_v38 = vld [vmem:[%s2738_s1 + $0x2ac] ss:$24 sps:$4 sm:$0xff]  }
  0x5a   : > { %933 = vmatprep.subr.bf16.mxu0 %v2288_v18  ;;  %2775 = vst [vmem:[#allocation20_spill] sm:$0xff] %v2320_v30  ;;  %2776 = vst [vmem:[#allocation21_spill] sm:$0xff] %v2326_v38  ;;  %v2332_v18 = vld [vmem:[%s2738_s1 + $0x70] ss:$24 sps:$4 sm:$0xff]   ;;  %917 = vmatpush1.bf16.msra.mxu1 %v2320_v30  ;;  %v2362_v30 = vld [vmem:[%s2738_s1 + $0xd4] ss:$24 sps:$4 sm:$0xff]  }
  0x5b   : > { %2777 = vst [vmem:[#allocation22_spill] sm:$0xff] %v2332_v18  ;;  %918 = vmatprep.subr.bf16.mxu1 %v2326_v38  ;;  %2780 = vst [vmem:[#allocation25_spill] sm:$0xff] %v2362_v30  ;;  %v2368_v38 = vld [vmem:[%s2738_s1 + $0x2d8] ss:$24 sps:$4 sm:$0xff]  }
  0x5d   : > { %934 = vmatpush1.bf16.msra.mxu0 %v2307_v13  ;;  %v2350_v13 = vld [vmem:[%s2738_s1 + $0x2dc] ss:$24 sps:$4 sm:$0xff]  }
  0x5e   : > { %935 = vmatprep.subr.bf16.mxu0 %v2314_v19  ;;  %v2356_v19 = vld [vmem:[%s2738_s1 + $0xa0] ss:$24 sps:$4 sm:$0xff]   ;;  %919 = vmatpush1.bf16.msra.mxu1 %v2344_v26 }
  0x5f   : > { %2779 = vst [vmem:[#allocation24_spill] sm:$0xff] %v2356_v19  ;;  %920 = vmatprep.subr.bf16.mxu1 %v2350_v13 }
  0x61   : > { %936 = vmatpush1.bf16.msra.mxu0 %v2332_v18  ;;  %v2381_v18 = vld [vmem:[%s2738_s1 + $0x104] ss:$24 sps:$4 sm:$0xff]  }
  0x62   : > { %937 = vmatprep.subr.bf16.mxu0 %v2338_v32  ;;  %v2375_v32 = vld [vmem:[%s2738_s1 + $0xd0] ss:$24 sps:$4 sm:$0xff]   ;;  %2781 = vst [vmem:[#allocation26_spill] sm:$0xff] %v2381_v18  ;;  %921 = vmatpush1.bf16.msra.mxu1 %v2368_v38 }
  0x63   : > { %1048 = vmatprep.subr.bf16.mxu1 %v1916_v1  ;;  %v2404_v1 = vld [vmem:[%s2738_s1 + $0x130] ss:$24 sps:$4 sm:$0xff]  }
  0x65   : > { %938 = vmatpush1.bf16.msra.mxu0 %v2356_v19  ;;  %v2389_v19 = vld [vmem:[%s2738_s1 + $0x100] ss:$24 sps:$4 sm:$0xff]   ;;  %923 = vmatmul.mubr.bf16.vlgmr.msra.gmra.mrb[0].mxu1 %v2276_v34 }
  0x66   : > { %939 = vmatprep.subr.bf16.mxu0 %v2362_v30  ;;  %v2396_v30 = vld [vmem:[%s2738_s1 + $0x134] ss:$24 sps:$4 sm:$0xff]   ;;  %1049 = vmatpush1.bf16.msra.mxu1 %v1921_v2  ;;  %v2418_v2 = vld [vmem:[%s2738_s1 + $0x160] ss:$24 sps:$4 sm:$0xff]  }
  0x67   : > { %1050 = vmatprep.subr.bf16.mxu1 %v1927_v3  ;;  %v2424_v3 = vld [vmem:[%s2738_s1 + $0x194] ss:$24 sps:$4 sm:$0xff]  }
  0x69   : > { %940 = vmatpush1.bf16.msra.mxu0 %v2375_v32 }
  0x6a   : > { %941 = vmatprep.subr.bf16.mxu0 %v2381_v18  ;;  %v2410_v18 = vld [vmem:[%s2738_s1 + $0x164] ss:$24 sps:$4 sm:$0xff]   ;;  %1051 = vmatpush1.bf16.msra.mxu1 %v1933_v4  ;;  %v2432_v4 = vld [vmem:[%s2738_s1 + $0x190] ss:$24 sps:$4 sm:$0xff]  }
  0x6b   : > { %1052 = vmatprep.subr.bf16.mxu1 %v1939_v5  ;;  %v2438_v5 = vld [vmem:[%s2738_s1 + $0x1c4] ss:$24 sps:$4 sm:$0xff]  }
  0x6d   : > { %942 = vmatpush1.bf16.msra.mxu0 %v2389_v19 }
  0x6e   : > { %943 = vmatprep.subr.bf16.mxu0 %v2396_v30  ;;  %1053 = vmatpush1.bf16.msra.mxu1 %v1945_v6  ;;  %v2446_v6 = vld [vmem:[%s2738_s1 + $0x1c0] ss:$24 sps:$4 sm:$0xff]  }
  0x6f   : > { %1054 = vmatprep.subr.bf16.mxu1 %v1951_v7  ;;  %v2452_v7 = vld [vmem:[%s2738_s1 + $0x1f4] ss:$24 sps:$4 sm:$0xff]  }
  0x71   : > { %944 = vmatpush1.bf16.msra.mxu0 %v2404_v1 }
  0x72   : > { %945 = vmatprep.subr.bf16.mxu0 %v2410_v18  ;;  %1055 = vmatpush1.bf16.msra.mxu1 %v1957_v8  ;;  %v2460_v8 = vld [vmem:[%s2738_s1 + $0x1f0] ss:$24 sps:$4 sm:$0xff]  }
  0x73   : > { %1056 = vmatprep.subr.bf16.mxu1 %v1963_v9  ;;  %v2466_v9 = vld [vmem:[%s2738_s1 + $0x224] ss:$24 sps:$4 sm:$0xff]  }
  0x75   : > { %946 = vmatpush1.bf16.msra.mxu0 %v2418_v2 }
  0x76   : > { %947 = vmatprep.subr.bf16.mxu0 %v2424_v3  ;;  %1057 = vmatpush1.bf16.msra.mxu1 %v1969_v10  ;;  %v2474_v10 = vld [vmem:[%s2738_s1 + $0x220] ss:$24 sps:$4 sm:$0xff]  }
  0x77   : > { %1058 = vmatprep.subr.bf16.mxu1 %v1975_v14  ;;  %v2480_v14 = vld [vmem:[%s2738_s1 + $0x254] ss:$24 sps:$4 sm:$0xff]  }
  0x79   : > { %948 = vmatpush1.bf16.msra.mxu0 %v2432_v4 }
  0x7a   : > { %949 = vmatprep.subr.bf16.mxu0 %v2438_v5  ;;  %1059 = vmatpush1.bf16.msra.mxu1 %v1991_v17  ;;  %v2488_v17 = vld [vmem:[%s2738_s1 + $0x250] ss:$24 sps:$4 sm:$0xff]  }
  0x7b   : > { %1060 = vmatprep.subr.bf16.mxu1 %v2000_v20  ;;  %v2494_v20 = vld [vmem:[%s2738_s1 + $0x284] ss:$24 sps:$4 sm:$0xff]  }
  0x7d   : > { %950 = vmatpush1.bf16.msra.mxu0 %v2446_v6 }
  0x7e   : > { %951 = vmatprep.subr.bf16.mxu0 %v2452_v7  ;;  %1061 = vmatpush1.bf16.msra.mxu1 %v2018_v23  ;;  %v2502_v23 = vld [vmem:[%s2738_s1 + $0x280] ss:$24 sps:$4 sm:$0xff]  }
  0x7f   : > { %1062 = vmatprep.subr.bf16.mxu1 %v2023_v24  ;;  %v2508_v24 = vld [vmem:[%s2738_s1 + $0x2b4] ss:$24 sps:$4 sm:$0xff]  }
  0x81   : > { %952 = vmatpush1.bf16.msra.mxu0 %v2460_v8 }
  0x82   : > { %953 = vmatprep.subr.bf16.mxu0 %v2466_v9  ;;  %1063 = vmatpush1.bf16.msra.mxu1 %v2049_v29  ;;  %v2516_v29 = vld [vmem:[%s2738_s1 + $0x2b0] ss:$24 sps:$4 sm:$0xff]  }
  0x83   : > { %1064 = vmatprep.subr.bf16.mxu1 %v2057_v31  ;;  %v2522_v31 = vld [vmem:[%s2738_s1 + $0x2e4] ss:$24 sps:$4 sm:$0xff]  }
  0x85   : > { %954 = vmatpush1.bf16.msra.mxu0 %v2474_v10 }
  0x86   : > { %955 = vmatprep.subr.bf16.mxu0 %v2480_v14  ;;  %1065 = vmatpush1.bf16.msra.mxu1 %v2082_v36  ;;  %v2530_v36 = vld [vmem:[%s2738_s1 + $0x2e0] ss:$24 sps:$4 sm:$0xff]  }
  0x87   : > { %1066 = vmatprep.subr.bf16.mxu1 %v2087_v37 }
  0x89   : > { %956 = vmatpush1.bf16.msra.mxu0 %v2488_v17 }
  0x8a   : > { %957 = vmatprep.subr.bf16.mxu0 %v2494_v20  ;;  %1067 = vmatpush1.bf16.msra.mxu1 %v2108_v41 }
  0x8b   : > { %1068 = vmatprep.subr.bf16.mxu1 %v2115_v42 }
  0x8d   : > { %958 = vmatpush1.bf16.msra.mxu0 %v2502_v23 }
  0x8e   : > { %959 = vmatprep.subr.bf16.mxu0 %v2508_v24  ;;  %1069 = vmatpush1.bf16.msra.mxu1 %v2134_v45  ;;  %v353_v45 = vld [vmem:[%s1910_s27] sm:$0x3f] }
  0x8f   : > { %1070 = vmatprep.subr.bf16.mxu1 %v2139_v46  ;;  %v354_v46 = vunpack.c.l.bf16 %v353_v45 }
  0x91   : > { %960 = vmatpush1.bf16.msra.mxu0 %v2516_v29 }
  0x92   : > { %961 = vmatprep.subr.bf16.mxu0 %v2522_v31  ;;  %1071 = vmatpush1.bf16.msra.mxu1 %v2157_v49 }
  0x93   : > { %1072 = vmatprep.subr.bf16.mxu1 %v2163_v50  ;;  %v991_v50 = vrot.slane %v354_v46, 4 }
  0x95   : > { %962 = vmatpush1.bf16.msra.mxu0 %v2530_v36 }
  0x96   : > { %1089 = vmatprep.subr.bf16.mxu0 %v1980_v15  ;;  %1073 = vmatpush1.bf16.msra.mxu1 %v2182_v53  ;;  %v2782_v15 = vld [vmem:[#allocation12_spill] sm:$0xff] }
  0x97   : > { %1074 = vmatprep.subr.bf16.mxu1 %v2187_v54 }
  0x98   : > { %964 = vmatmul.mubr.bf16.vlgmr.msra.gmra.mrb[4].mxu0 %v2276_v34 }
  0x99   : > { %1090 = vmatpush1.bf16.msra.mxu0 %v1985_v16  ;;  %v2783_v16 = vld [vmem:[#allocation13_spill] sm:$0xff] }
  0x9a   : > { %1091 = vmatprep.subr.bf16.mxu0 %v2006_v21  ;;  %1075 = vmatpush1.bf16.msra.mxu1 %v2205_v57  ;;  %v2784_v21 = vld [vmem:[#allocation16_spill] sm:$0xff] }
  0x9b   : > { %1076 = vmatprep.subr.bf16.mxu1 %v2211_v58  ;;  %v340_v58 = vld [vmem:[%s2739_s2] sm:$0x3] }
  0x9d   : > { %1092 = vmatpush1.bf16.msra.mxu0 %v2011_v22  ;;  %v2785_v22 = vld [vmem:[#allocation17_spill] sm:$0xff] }
  0x9e   : > { %1093 = vmatprep.subr.bf16.mxu0 %v2028_v25  ;;  %1077 = vmatpush1.bf16.msra.mxu1 %v2230_v61  ;;  %v2786_v25 = vld [vmem:[#allocation20_spill] sm:$0xff] }
  0x9f   : > { %1078 = vmatprep.subr.bf16.mxu1 %v2235_v62 }
  0xa1   : > { %1094 = vmatpush1.bf16.msra.mxu0 %v2038_v27  ;;  %v2787_v27 = vld [vmem:[#allocation21_spill] sm:$0xff] }
  0xa2   : > { %1095 = vmatprep.subr.bf16.mxu0 %v2044_v28  ;;  %1079 = vmatpush1.bf16.msra.mxu1 %v2253_v11 }
  0xa3   : > { %1130 = vmatprep.subr.bf16.mxu1 %v2259_v12 }
  0xa5   : > { %1096 = vmatpush1.bf16.msra.mxu0 %v2068_v33 }
  0xa6   : > { %1097 = vmatprep.subr.bf16.mxu0 %v2076_v35 }
  0xa9   : > { %1098 = vmatpush1.bf16.msra.mxu0 %v2096_v39 }
  0xaa   : > { %1099 = vmatprep.subr.bf16.mxu0 %v2103_v40 }
  0xad   : > { %1100 = vmatpush1.bf16.msra.mxu0 %v2122_v43 }
  0xae   : > { %1101 = vmatprep.subr.bf16.mxu0 %v2128_v44 }
  0xb1   : > { %1102 = vmatpush1.bf16.msra.mxu0 %v2146_v47  ;;  %v2788_v47 = vld [vmem:[#allocation10_spill] sm:$0xff] }
  0xb2   : > { %1103 = vmatprep.subr.bf16.mxu0 %v2152_v48 }
  0xb5   : > { %1104 = vmatpush1.bf16.msra.mxu0 %v2170_v51 }
  0xb6   : > { %1105 = vmatprep.subr.bf16.mxu0 %v2176_v52 }
  0xb9   : > { %1106 = vmatpush1.bf16.msra.mxu0 %v2194_v55 }
  0xba   : > { %1107 = vmatprep.subr.bf16.mxu0 %v2200_v56  ;;  %v2789_v56 = vld [vmem:[#allocation9_spill] sm:$0xff] }
  0xbb   : > { %v345_v57 = vsub.s32 0, %v2789_v56 }
  0xbd   : > { %1108 = vmatpush1.bf16.msra.mxu0 %v2218_v59  ;;  %v349_v59 = vsub.s32 1, %v2789_v56 }
  0xbe   : > { %1109 = vmatprep.subr.bf16.mxu0 %v2224_v60  ;;  %v2587_v60 = vrot.slane %v340_v58, %v345_v57 }
  0xbf   : > { %v2589_v61 = vrot.slane %v340_v58, %v349_v59 }
  0xc1   : > { %1110 = vmatpush1.bf16.msra.mxu0 %v2242_v63 }
  0xc2   : > { %1111 = vmatprep.subr.bf16.mxu0 %v2248_v0 }
  0xc5   : > { %1112 = vmatpush1.bf16.msra.mxu0 %v2782_v15 }
  0xc6   : > { %1113 = vmatprep.subr.bf16.mxu0 %v2783_v16  ;;  %v355_v16 = vunpack.c.h.bf16 %v353_v45 }
  0xc9   : > { %1114 = vmatpush1.bf16.msra.mxu0 %v2784_v21 }
  0xca   : > { %1115 = vmatprep.subr.bf16.mxu0 %v2785_v22 }
  0xcd   : > { %1116 = vmatpush1.bf16.msra.mxu0 %v2786_v25 }
  0xce   : > { %1117 = vmatprep.subr.bf16.mxu0 %v2787_v27 }
  0xd1   : > { %1118 = vmatpush1.bf16.msra.mxu0 %v2344_v26 }
  0xd2   : > { %1119 = vmatprep.subr.bf16.mxu0 %v2350_v13 }
  0xd5   : > { %1120 = vmatpush1.bf16.msra.mxu0 %v2368_v38 }
 0x12b   : > { %v883_v28 = vpop.f32.mrb[0].mxu0 }
 0x12c   : > { %v885_v33 = vpop.f32.mrb[1].mxu0 }
 0x12d   : > { %v974_v35 = vcombine.low %v883_v28, %v885_v33  ;;  %v887_v37 = vpop.f32.mrb[2].mxu0 }
 0x12e   : > { %v888_v39 = vpop.f32.mrb[3].mxu0 }
 0x12f   : > { %v981_v48 = vrot.slane %v974_v35, %v2788_v47  ;;  %v2790_v39 = vld [vmem:[#allocation11_spill] sm:$0xff] }
 0x131   : > { %v983_v49 = vadd.f32 %v981_v48, %v354_v46  ;;  %v2791_v46 = vld [vmem:[#allocation14_spill] sm:$0xff]  ;;  %v2792_v48 = vld [vmem:[#allocation15_spill] sm:$0xff] }
 0x133   : > { %v1505_v26 = vmul.f32 -1.442695, %v983_v49  ;;  %v2793_v49 = vld [vmem:[#allocation18_spill] sm:$0xff] }
 0x135   : > { %1766 = vpow2.f32 %v1505_v26  ;;  %v2794_v26 = vld [vmem:[#allocation19_spill] sm:$0xff] }
 0x138   : > { %v924_v40 = vpop.f32.mrb[0].mxu1 }
 0x139   : > { %v926_v41 = vpop.f32.mrb[1].mxu1 }
 0x13a   : > { %v995_v42 = vcombine.low %v924_v40, %v926_v41  ;;  %v928_v43 = vpop.f32.mrb[2].mxu1 }
 0x13b   : > { %v929_v44 = vpop.f32.mrb[3].mxu1 }
 0x13c   : > { %v1002_v51 = vrot.slane %v995_v42, %v2788_v47 }
 0x13e   : > { %v1004_v52 = vadd.f32 %v1002_v51, %v991_v50  ;;  %v2795_v50 = vld [vmem:[#allocation22_spill] sm:$0xff]  ;;  %v2796_v51 = vld [vmem:[#allocation23_spill] sm:$0xff] }
 0x13f   : > { %v1767_v54 = vpop.eup %1766 }
 0x140   : > { %v1506_v53 = vmul.f32 -1.442695, %v1004_v52  ;;  %v987_v55 = vadd.f32 1.0, %v1767_v54  ;;  %v2797_v52 = vld [vmem:[#allocation24_spill] sm:$0xff]  ;;  %v2799_v54 = vld [vmem:[#allocation26_spill] sm:$0xff] }
 0x142   : > { %1768 = vpow2.f32 %v1506_v53  ;;  %v2798_v53 = vld [vmem:[#allocation25_spill] sm:$0xff] }
 0x143   : > { %1770 = vrcp.f32 %v987_v55 }
 0x14c   : > { %v1769_v62 = vpop.eup %1768 }
 0x14d   : > { %v1008_v12 = vadd.f32 1.0, %v1769_v62  ;;  %v1771_v22 = vpop.eup %1770 }
 0x14f   : > { %1772 = vrcp.f32 %v1008_v12 }
 0x159   : > { %v1773_v28 = vpop.eup %1772 }
 0x15a   : > { %v1027_v33 = vsub.f32 1.0, %v1773_v28  ;;  %v1029_v40 = vmul.f32 %v1773_v28, %v2790_v39  ;;  %v1856_v28 = vmov (!%p1510_p5), 0.0|0.0  }
 0x15b   : > { %1570 = vmatprep.subr.bf16.mxu0 (!%p1510_p5), %v1856_v28 }
 0x16b   : > { %v965_v63 = vpop.f32.mrb[4].mxu0 }
 0x16c   : > { %v1011_v0 = vadd.f32 %v965_v63, %v2587_v60  ;;  %v967_v11 = vpop.f32.mrb[5].mxu0 }
 0x16d   : > { %v1012_v13 = vadd.f32 %v967_v11, %v2589_v61  ;;  %v969_v34 = vpop.f32.mrb[6].mxu0 }
 0x16e   : > { %v970_v38 = vpop.f32.mrb[7].mxu0 }
 0x16f   : > { %v1015_v15 = vcombine.low %v1011_v0, %v1012_v13 }
 0x171   : > { %v1022_v21 = vrot.slane %v1015_v15, %v2788_v47 }
 0x173   : > { %v1024_v25 = vmul.f32 %v1771_v22, %v1022_v21 }
 0x175   : > { %v1025_v27 = vadd.f32 %v1024_v25, %v355_v16 }
 0x177   : > { %1774 = vtanh.f32 %v1025_v27  ;;  %v1243_v27 = vld [vmem:[%s2740_s3 + $0x10] sm:$0xff] (!%p1510_p5) }
 0x181   : > { %v1775_v35 = vpop.eup %1774 }
 0x182   : > { %v1028_v37 = vmul.f32 %v1775_v35, %v1027_v33  ;;  %v1244_v35 = vld [vmem:[%s2740_s3 + $0x18] sm:$0xff] (!%p1510_p5) }
 0x184   : > { %v2595_v41 = vadd.f32 %v1029_v40, %v1028_v37  ;;  %v1858_v37 = vmov (!%p1510_p5), 0.0   ;;  %v1574_v40 = vpack.c.bf16 (!%p1510_p5), %v1244_v35, %v1243_v27 }
 0x186   : > { %v1042_v42 = vrot.slane %v2595_v41, %v2788_v47 }
 0x188   : > { %v1043_v43 = vcombine.high %v1042_v42, %v1042_v42  ;;  %v1046_v45 = vpack.c.bf16 %v1042_v42, %v1042_v42  ;;  %v1245_v42 = vld [vmem:[%s2740_s3 + $0x20] sm:$0xff] (!%p1510_p5) }
 0x18a   : > { %v1047_v44 = vpack.c.bf16 %v1043_v43, %v1043_v43  ;;  %v1246_v43 = vld [vmem:[%s2740_s3 + $0x28] sm:$0xff] (!%p1510_p5) }
 0x18c   : > { %1080 = vmatprep.mubr.bf16.mxu1 %v1047_v44  ;;  %1121 = vmatprep.mubr.bf16.mxu0 %v1047_v44 }
 0x18d   : > { %1081 = vmatmul.mubr.bf16.vlgmr.msra.gmra.mrb[4].mxu1 %v1046_v45  ;;  %1122 = vmatmul.mubr.bf16.vlgmr.msra.gmra.mrb[8].mxu0 %v1046_v45 }
 0x18e   : > { %1131 = vmatpush1.bf16.msra.mxu1 %v2791_v46  ;;  %1162 = vmatprep.mubr.bf16.mxu1 %v1047_v44  ;;  %v1247_v46 = vld [vmem:[%s2740_s3 + $0x30] sm:$0xff] (!%p1510_p5) }
 0x18f   : > { %1132 = vmatprep.subr.bf16.mxu1 %v2792_v48  ;;  %1567 = vmatprep.mubr.msk.f32.mxu0 (!%p1510_p5), %vm1857_vm0, %v1858_v37  ;;  %v1248_v48 = vld [vmem:[%s2740_s3 + $0x38] sm:$0xff] (!%p1510_p5) }
 0x192   : > { %1133 = vmatpush1.bf16.msra.mxu1 %v2793_v49  ;;  %v1580_v49 = vpack.c.bf16 (!%p1510_p5), %v1248_v48, %v1247_v46 }
 0x193   : > { %1134 = vmatprep.subr.bf16.mxu1 %v2794_v26  ;;  %v1249_v26 = vld [vmem:[%s2740_s3 + $0x40] sm:$0xff] (!%p1510_p5) }
 0x196   : > { %1135 = vmatpush1.bf16.msra.mxu1 %v2795_v50  ;;  %v1250_v50 = vld [vmem:[%s2740_s3 + $0x48] sm:$0xff] (!%p1510_p5) }
 0x197   : > { %1136 = vmatprep.subr.bf16.mxu1 %v2796_v51  ;;  %v1583_v51 = vpack.c.bf16 (!%p1510_p5), %v1250_v50, %v1249_v26 }
 0x19a   : > { %1137 = vmatpush1.bf16.msra.mxu1 %v2797_v52  ;;  %v1251_v52 = vld [vmem:[%s2740_s3 + $0x50] sm:$0xff] (!%p1510_p5) }
 0x19b   : > { %1138 = vmatprep.subr.bf16.mxu1 %v2798_v53  ;;  %v1252_v53 = vld [vmem:[%s2740_s3 + $0x58] sm:$0xff] (!%p1510_p5) }
 0x19e   : > { %1139 = vmatpush1.bf16.msra.mxu1 %v2375_v32 }
 0x19f   : > { %1140 = vmatprep.subr.bf16.mxu1 %v2799_v54  ;;  %v1586_v54 = vpack.c.bf16 (!%p1510_p5), %v1252_v53, %v1251_v52 }
 0x1a2   : > { %1141 = vmatpush1.bf16.msra.mxu1 %v2389_v19 }
 0x1a3   : > { %1142 = vmatprep.subr.bf16.mxu1 %v2396_v30 }
 0x1a6   : > { %1143 = vmatpush1.bf16.msra.mxu1 %v2404_v1 }
 0x1a7   : > { %1144 = vmatprep.subr.bf16.mxu1 %v2410_v18 }
 0x1aa   : > { %1145 = vmatpush1.bf16.msra.mxu1 %v2418_v2 }
 0x1ab   : > { %1146 = vmatprep.subr.bf16.mxu1 %v2424_v3 }
 0x1ae   : > { %1147 = vmatpush1.bf16.msra.mxu1 %v2432_v4 }
 0x1af   : > { %1148 = vmatprep.subr.bf16.mxu1 %v2438_v5 }
 0x1b2   : > { %1149 = vmatpush1.bf16.msra.mxu1 %v2446_v6 }
 0x1b3   : > { %1150 = vmatprep.subr.bf16.mxu1 %v2452_v7  ;;  %v1507_v7 = vld [vmem:[%s1910_s27 + $0x6] sm:$0x3f] }
 0x1b4   : > { %v1034_v11 = vunpack.c.h.bf16 %v1507_v7 }
 0x1b6   : > { %1151 = vmatpush1.bf16.msra.mxu1 %v2460_v8 }
 0x1b7   : > { %1152 = vmatprep.subr.bf16.mxu1 %v2466_v9  ;;  %v1033_v9 = vunpack.c.l.bf16 %v1507_v7 }
 0x1ba   : > { %1153 = vmatpush1.bf16.msra.mxu1 %v2474_v10 }
 0x1bb   : > { %1154 = vmatprep.subr.bf16.mxu1 %v2480_v14 }
 0x1be   : > { %1155 = vmatpush1.bf16.msra.mxu1 %v2488_v17  ;;  %v1190_v17 = vrot.slane %v1033_v9, 4 }
 0x1bf   : > { %1156 = vmatprep.subr.bf16.mxu1 %v2494_v20 }
 0x1c2   : > { %1157 = vmatpush1.bf16.msra.mxu1 %v2502_v23 }
 0x1c3   : > { %1158 = vmatprep.subr.bf16.mxu1 %v2508_v24 }
 0x1c6   : > { %1159 = vmatpush1.bf16.msra.mxu1 %v2516_v29 }
 0x1c7   : > { %1160 = vmatprep.subr.bf16.mxu1 %v2522_v31 }
 0x1ca   : > { %1161 = vmatpush1.bf16.msra.mxu1 %v2530_v36 }
 0x1cd   : > { %1163 = vmatmul.mubr.bf16.vlgmr.msra.gmra.mrb[8].mxu1 %v1046_v45  ;;  %v1577_v45 = vpack.c.bf16 (!%p1510_p5), %v1246_v43, %v1245_v42 }
 0x260   : > { %v1082_v18 = vpop.f32.mrb[4].mxu1  ;;  %v1123_v30 = vpop.f32.mrb[8].mxu0 }
 0x261   : > { %v1084_v19 = vpop.f32.mrb[5].mxu1  ;;  %v1125_v32 = vpop.f32.mrb[9].mxu0 }
 0x262   : > { %v1173_v1 = vcombine.low %v1082_v18, %v1084_v19  ;;  %v1194_v2 = vcombine.low %v1123_v30, %v1125_v32  ;;  %v1086_v3 = vpop.f32.mrb[6].mxu1  ;;  %v1127_v4 = vpop.f32.mrb[10].mxu0  ;;  %v1253_v18 = vld [vmem:[%s2740_s3 + $0x60] sm:$0xff] (!%p1510_p5)  ;;  %v1254_v30 = vld [vmem:[%s2740_s3 + $0x68] sm:$0xff] (!%p1510_p5)  ;;  %v1255_v32 = vld [vmem:[%s2740_s3 + $0x70] sm:$0xff] (!%p1510_p5) }
 0x263   : > { %v1087_v5 = vpop.f32.mrb[7].mxu1  ;;  %v1128_v6 = vpop.f32.mrb[11].mxu0  ;;  %v1589_v19 = vpack.c.bf16 (!%p1510_p5), %v1254_v30, %v1253_v18  ;;  %v1511_v3 = vld [vmem:[%s2741_s4] ss:$0 sm:$0xff] (!%p1510_p5) }
 0x264   : > { %v1180_v8 = vrot.slane %v1173_v1, %v2788_v47  ;;  %v1201_v20 = vrot.slane %v1194_v2, %v2788_v47  ;;  %v1256_v1 = vld [vmem:[%s2740_s3 + $0x78] sm:$0xff] (!%p1510_p5) }
 0x265   : > { %v1592_v2 = vpack.c.bf16 (!%p1510_p5), %v1256_v1, %v1255_v32 }
 0x266   : > { %v1182_v10 = vadd.f32 %v1180_v8, %v1033_v9  ;;  %v1203_v23 = vadd.f32 %v1201_v20, %v1190_v17 }
 0x268   : > { %v1508_v14 = vmul.f32 -1.442695, %v1182_v10  ;;  %v1509_v24 = vmul.f32 -1.442695, %v1203_v23 }
 0x26a   : > { %1776 = vpow2.f32 %v1508_v14 }
 0x26b   : > { %1778 = vpow2.f32 %v1509_v24 }
 0x274   : > { %v1777_v29 = vpop.eup %1776 }
 0x275   : > { %v1186_v31 = vadd.f32 1.0, %v1777_v29  ;;  %v1779_v55 = vpop.eup %1778 }
 0x276   : > { %v1207_v63 = vadd.f32 1.0, %v1779_v55 }
 0x277   : > { %1780 = vrcp.f32 %v1186_v31 }
 0x278   : > { %1782 = vrcp.f32 %v1207_v63 }
 0x281   : > { %v1781_v13 = vpop.eup %1780 }
 0x282   : > { %v1783_v15 = vpop.eup %1782 }
 0x283   : > { %v1226_v16 = vsub.f32 1.0, %v1783_v15 }
 0x2a0   : > { %v1164_v36 = vpop.f32.mrb[8].mxu1 }
 0x2a1   : > { %v1210_v56 = vadd.f32 %v1164_v36, %v2587_v60  ;;  %v1166_v57 = vpop.f32.mrb[9].mxu1  ;;  %v1228_v60 = vmul.f32 %v1783_v15, %v2595_v41 }
 0x2a2   : > { %v1211_v58 = vadd.f32 %v1166_v57, %v2589_v61  ;;  %v1168_v59 = vpop.f32.mrb[10].mxu1  ;;  %v1242_v61 = vld [vmem:[%s2740_s3 + $0x8] sm:$0xff] (!%p1510_p5) }
 0x2a3   : > { %v1169_v62 = vpop.f32.mrb[11].mxu1 }
 0x2a4   : > { %v1214_v0 = vcombine.low %v1210_v56, %v1211_v58 }
 0x2a6   : > { %v1221_v12 = vrot.slane %v1214_v0, %v2788_v47  ;;  %v1241_v47 = vld [vmem:[%s2740_s3] sm:$0xff] (!%p1510_p5) }
 0x2a7   : > { %v1571_v33 = vpack.c.bf16 (!%p1510_p5), %v1242_v61, %v1241_v47 }
 0x2a8   : > { %v1223_v34 = vmul.f32 %v1781_v13, %v1221_v12 }
 0x2a9   : > { %1572 = vmatpush3.bf16.msra.mxu0 (!%p1510_p5), %v1571_v33 }
 0x2aa   : > { %v1224_v38 = vadd.f32 %v1223_v34, %v1034_v11  ;;  %1573 = vmatprep.subr.bf16.mxu0 (!%p1510_p5), %v1856_v28 }
 0x2ac   : > { %1784 = vtanh.f32 %v1224_v38 }
 0x2ad   : > { %1575 = vmatpush3.bf16.msra.mxu0 (!%p1510_p5), %v1574_v40 }
 0x2ae   : > { %1576 = vmatprep.subr.bf16.mxu0 (!%p1510_p5), %v1856_v28 }
 0x2b1   : > { %1578 = vmatpush3.bf16.msra.mxu0 (!%p1510_p5), %v1577_v45 }
 0x2b2   : > { %1579 = vmatprep.subr.bf16.mxu0 (!%p1510_p5), %v1856_v28 }
 0x2b5   : > { %1234 = sbr.rel (%p1510_p5) target bundleno = 927 (0x39f), region = 48  ;;  %1581 = vmatpush3.bf16.msra.mxu0 (!%p1510_p5), %v1580_v49 }
 0x2b6   : > { %v1785_v21 = vpop.eup %1784  ;;  %1582 = vmatprep.subr.bf16.mxu0 (!%p1510_p5), %v1856_v28 }
 0x2b7   : > { %v1227_v22 = vmul.f32 %v1785_v21, %v1226_v16 }
 0x2b9   : > { %v1229_v25 = vadd.f32 %v1228_v60, %v1227_v22  ;;  %1584 = vmatpush3.bf16.msra.mxu0 (!%p1510_p5), %v1583_v51 }
 0x2ba   : > { %1585 = vmatprep.subr.bf16.mxu0 (!%p1510_p5), %v1856_v28 }
 0x2bb   : > { %1230 = vst [vmem:[#allocation2] sm:$0xf] %v1229_v25  ;;  %v1236_v39 = vrot.slane (!%p1510_p5), %v1229_v25, 2 }
 0x2bd   : > { %v1238_v41 = vadd.f32 %v1236_v39, %v1229_v25  ;;  %1587 = vmatpush3.bf16.msra.mxu0 %v1586_v54 }
 0x2be   : > { %1588 = vmatprep.subr.bf16.mxu0 %v1856_v28 }
 0x2bf   : > { %v1239_v44 = vmul.f32 0.5, %v1238_v41 }
 0x2c1   : > { %1240 = vst [vmem:[#allocation3] sm:$0x3] %v1239_v44  ;;  %1590 = vmatpush3.bf16.msra.mxu0 %v1589_v19 }
 0x2c2   : > { %1591 = vmatprep.subr.bf16.mxu0 %v1856_v28 }
 0x2c5   : > { %1593 = vmatpush3.bf16.msra.mxu0 %v1592_v2 }
 0x2c8   : > { %1568 = vmatmul.mubr.f32.vlgmr.msra.gmra.mrb[0].mxu0 %v1239_v44 }
 0x39b   : > { %v1330_v4 = vpop.f32.mrb[0].mxu0 }
 0x39c   : > { %v1331_v5 = vadd.f32 %v1511_v3, %v1330_v4  ;;  %v1569_v6 = vpop.f32.mrb[1].mxu0 }
 0x39e   : > { %1334 = vst [vmem:[#allocation5] sm:$0x3] %v1331_v5 }
 0x39f PF: > { %p1603_p6 = scmp.eq.s32.totalorder %s1902_s22, 3  ;;  %s1859_s20 = smov [#allocation3]  }
 0x3a0   : > { %s1342_s23 = sshll.u32 %s1859_s20, 4  ;;  %s1860_s24 = smov [#allocation5]   ;;  %s1343_s23 = int_to_ptr.vmem [resolvable:$true] %s1342_s23 }
 0x3a1   : > { %s1353_s25 = sshll.u32 %s1860_s24, 4  ;;  %s1786_s26 = scalar_lea.vmem %s1343_s23, 32  ;;  %s1354_s25 = int_to_ptr.vmem [resolvable:$true] %s1353_s25 }
 0x3a2   : > { %p1787_p7 = scmp.ne.s32.totalorder %s1343_s23, %s1786_s26  ;;  %p1793_p10 = scmp.lt.s32.totalorder %s1343_s23, %s1343_s23 }
 0x3a3   : > { %p1794_p11 = scmp.lt.s32.totalorder %s1786_s26, %s1786_s26 }
 0x3a4   : > { %p1788_p8 = pnand %p1787_p7, %p1603_p6 }
 0x3a5   : > { %p1795_p12 = por %p1794_p11, %p1793_p10 }
 0x3a6   : > { %p1789_p9 = pneg %p1788_p8 }
 0x3a8   : > { %p1796_p13 = pnand %p1795_p12, %p1789_p9 }
 0x3aa   : > { %1799 = shalt.err (!%p1796_p13)
}
 0x3ab   : > { %s1800_s30 = scalar_lea.hbm %s2742_s5, 32 }
 0x3ac   : > { %p1801_p0 = scmp.ne.s32.totalorder %s2742_s5, %s1800_s30  ;;  %p1806_p3 = scmp.lt.u32.totalorder %s1800_s30, %s2742_s5 }
 0x3ae   : > { %p1802_p1 = pnand %p1801_p0, %p1603_p6 }
 0x3b0   : > { %p1803_p2 = pneg %p1802_p1 }
 0x3b2   : > { %p1808_p4 = pnand %p1806_p3, %p1803_p2 }
 0x3b4   : > { %1811 = shalt.err (!%p1808_p4)
}
 0x3b5   : > { %1596 = dma.vmem_to_hbm [thread:$0]  (%p1603_p6), %s1343_s23, 32, %s2742_s5, [#allocation4]  }
 0x3b6   : > { %s1812_s12 = scalar_lea.vmem %s1354_s25, 32  ;;  %p1819_p9 = scmp.lt.s32.totalorder %s1354_s25, %s1354_s25 }
 0x3b7   : > { %p1813_p5 = scmp.ne.s32.totalorder %s1354_s25, %s1812_s12  ;;  %p1820_p10 = scmp.lt.s32.totalorder %s1812_s12, %s1812_s12 }
 0x3b9   : > { %p1814_p7 = pnand %p1813_p5, %p1603_p6  ;;  %p1821_p11 = por %p1820_p10, %p1819_p9 }
 0x3bb   : > { %p1815_p8 = pneg %p1814_p7 }
 0x3bd   : > { %p1822_p12 = pnand %p1821_p11, %p1815_p8 }
 0x3bf   : > { %1825 = shalt.err (!%p1822_p12)
}
 0x3c0   : > { %s1826_s15 = scalar_lea.hbm %s2743_s6, 32 }
 0x3c1   : > { %p1827_p13 = scmp.ne.s32.totalorder %s2743_s6, %s1826_s15  ;;  %p1832_p2 = scmp.lt.u32.totalorder %s1826_s15, %s2743_s6 }
 0x3c3   : > { %p1828_p0 = pnand %p1827_p13, %p1603_p6 }
 0x3c5   : > { %p1829_p1 = pneg %p1828_p0 }
 0x3c7   : > { %p1834_p3 = pnand %p1832_p2, %p1829_p1 }
 0x3c9   : > { %1837 = shalt.err (!%p1834_p3)
}
 0x3ca   : > { %1598 = dma.vmem_to_hbm [thread:$0]  (%p1603_p6), %s1354_s25, 32, %s2743_s6, [#allocation6]  }
 0x3cb   : > { %1843 = dma.done.wait (%p1603_p6), [#allocation4], 32  }
 0x3cc   : > { %1845 = vsyncadd (%p1603_p6), [#allocation4], 4294967264 }
 0x3cd   : > { %1847 = dma.done.wait (%p1603_p6), [#allocation6], 32  }
 0x3ce   : > { %1849 = vsyncadd (%p1603_p6), [#allocation6], 4294967264 }
 0x3cf PF: > { %s19_s21 = sadd.s32 1, %s1852_s21  }
 0x3d0   : > { %p16_p4 = scmp.ge.s32.totalorder %s19_s21, 6  }
 0x3d2   :  { %18 = sbr.rel (!%p16_p4) target bundleno = 2 (0x2), region = 84 }
 0x3d9   :  { %1370 = vsyncpa [#allocation4], 1 }
 0x3da   :  { %1372 = vsyncpa [#allocation4 + $0x1], 1 }
 0x3db   :  { %1373 = vsyncpa [#allocation6], 1 }

</bundles_post_ra>
